<compile_context>
chip_gen: v6e
topology: v6e:2x2x1
jax: 0.10.0
libtpu: 0.0.40
codegen_flags: <defaults>
</compile_context>

<pallas_src>
import functools

import numpy as np
import jax
import jax.numpy as jnp
from jax.experimental import pallas as pl
from jax.experimental.pallas import tpu as pltpu

EPS = 1e-12          # torch.nn.functional.normalize default eps
NEG_INF = -1e30      # additive mask value for non-neighbour keys


# ----------------------------- RMS norm kernel ------------------------------
def _rms_kernel(x_ref, g_ref, o_ref, *, scale):
    x = x_ref[...]                                          # (C, ts)
    ss = jnp.sum(x * x, axis=0, keepdims=True)              # (1, ts)  L2^2 over channels
    inv = scale / jnp.maximum(jnp.sqrt(ss), EPS)
    o_ref[...] = x * inv * g_ref[...]


def _pick_s_tile(s):
    for ts in (2048, 1024, 512, 256, 128):
        if s % ts == 0:
            return ts
    return s


def rms_norm(x3, gamma):
    """x3: (B, C, S) f32; gamma: (C,). RMS_norm(images=False) over the C axis."""
    B, C, S = x3.shape
    ts = _pick_s_tile(S)
    g2 = gamma.reshape(C, 1)
    return pl.pallas_call(
        functools.partial(_rms_kernel, scale=float(C) ** 0.5),
        out_shape=jax.ShapeDtypeStruct((B, C, S), x3.dtype),
        grid=(B, S // ts),
        in_specs=[
            pl.BlockSpec((None, C, ts), lambda b, s: (b, 0, s)),
            pl.BlockSpec((C, 1), lambda b, s: (0, 0)),
        ],
        out_specs=pl.BlockSpec((None, C, ts), lambda b, s: (b, 0, s)),
        compiler_params=pltpu.CompilerParams(
            dimension_semantics=("parallel", "parallel")),
    )(x3, g2)


# ----------------------- Neighborhood attention kernel ----------------------
def _na_kernel(xn_ref, id_ref, bias_ref, wq_ref, wk_ref, wv_ref,
               bq_ref, bk_ref, bv_ref, wp_ref, bp_ref, o_ref, *, C):
    scale = float(C) ** -0.5
    x2 = xn_ref[...]                                        # (S, C)

    # q/k/v projections: three small MXU matmuls (weights split host-side).
    q = (jnp.dot(x2, wq_ref[...], preferred_element_type=jnp.float32)
         + bq_ref[...]) * scale
    k = jnp.dot(x2, wk_ref[...], preferred_element_type=jnp.float32) + bk_ref[...]
    v = jnp.dot(x2, wv_ref[...], preferred_element_type=jnp.float32) + bv_ref[...]

    # Dense logits over all S keys, masked to the clamped 3x3x3 neighbourhood
    # with a precomputed additive bias (0 / -1e30).  MXU NT matmul.
    logits = jax.lax.dot_general(q, k, (((1,), (1,)), ((), ())),
                                 preferred_element_type=jnp.float32)   # (S, S)
    logits = logits + bias_ref[...]

    # Numerically-stable softmax; masked entries underflow to exactly 0.
    m = jnp.max(logits, axis=1, keepdims=True)              # (S, 1)
    p = jnp.exp(logits - m)                                  # (S, S)
    den = jnp.sum(p, axis=1, keepdims=True)                  # (S, 1)
    ctx = jnp.dot(p, v, preferred_element_type=jnp.float32)  # (S, C)  MXU
    ctx = ctx * pl.reciprocal(den, approx=True)              # EUP, not VALU divide

    # Output projection + residual add (fused into this kernel).
    proj = jnp.dot(ctx, wp_ref[...], preferred_element_type=jnp.float32) + bp_ref[...]
    o_ref[...] = proj.astype(o_ref.dtype) + id_ref[...]


def _neighbourhood_bias(T, H, W):
    """Static (S, S) additive mask for the clamped 3x3x3 NATTEN window."""
    def nbr(L):
        start = np.clip(np.arange(L) - 1, 0, L - 3)
        j = np.arange(L)[None, :]
        return (j >= start[:, None]) & (j < start[:, None] + 3)

    nt, nh, nw = nbr(T), nbr(H), nbr(W)
    m = (nt[:, None, None, :, None, None]
         & nh[None, :, None, None, :, None]
         & nw[None, None, :, None, None, :])
    m = m.reshape(T * H * W, T * H * W)
    return np.where(m, np.float32(0.0), np.float32(NEG_INF)).astype(np.float32)


def neighbourhood_attention_3d(xn_view, id_view, bias, w_qkv, b_qkv,
                               w_proj, b_proj):
    """xn_view, id_view: (B, T*H*W, C) channels-last rows. Returns NA(xn) + id."""
    B, S, C = xn_view.shape
    w_q, w_k, w_v = w_qkv[:, :C], w_qkv[:, C:2 * C], w_qkv[:, 2 * C:]
    b_q, b_k, b_v = b_qkv[:, :C], b_qkv[:, C:2 * C], b_qkv[:, 2 * C:]

    def shared(shape):
        return pl.BlockSpec(shape, lambda b: (0, 0))

    return pl.pallas_call(
        functools.partial(_na_kernel, C=C),
        out_shape=jax.ShapeDtypeStruct((B, S, C), xn_view.dtype),
        grid=(B,),
        in_specs=[
            pl.BlockSpec((None, S, C), lambda b: (b, 0, 0)),   # normed x rows
            pl.BlockSpec((None, S, C), lambda b: (b, 0, 0)),   # residual rows
            shared((S, S)),                                    # neighbourhood bias
            shared((C, C)), shared((C, C)), shared((C, C)),    # w_q, w_k, w_v
            shared((1, C)), shared((1, C)), shared((1, C)),    # b_q, b_k, b_v
            shared((C, C)), shared((1, C)),                    # w_proj, b_proj
        ],
        out_specs=pl.BlockSpec((None, S, C), lambda b: (b, 0, 0)),
        compiler_params=pltpu.CompilerParams(dimension_semantics=("parallel",)),
    )(xn_view, id_view, bias, w_q, w_k, w_v, b_q, b_k, b_v, w_proj, b_proj)


# ------------------------------ full forward ---------------------------------
@jax.jit
def _forward(x, gamma, w_qkv, b_qkv, w_proj, b_proj, bias):
    B, C, T, H, W = x.shape
    S = T * H * W
    # RMS-norm output is consumed only by the attention kernel; the reshapes
    # below are flat reinterpretations (torch .view), not permutes.
    xn = rms_norm(x.reshape(B, C, S), gamma)                 # (B, C, S)
    xn_view = xn.reshape(B, S, C)                            # == .view(b, t, h, w, c)
    id_view = x.reshape(B, S, C)                             # residual, same reinterpretation
    y = neighbourhood_attention_3d(xn_view, id_view, bias,
                                   w_qkv, b_qkv, w_proj, b_proj)
    return y.reshape(B, C, T, H, W)                          # == .view(b, c, t, h, w)


def spatio_temporal_na_block(x, gamma, w_qkv, b_qkv, w_proj, b_proj):
    B, C, T, H, W = x.shape
    assert T >= 3 and H >= 3 and W >= 3, "kernel size 3 needs T, H, W >= 3"
    bias = jnp.asarray(_neighbourhood_bias(T, H, W))
    return _forward(x, gamma, w_qkv, b_qkv, w_proj, b_proj, bias)


# ------------------------- pure-JAX reference (check) ------------------------
def reference_forward(x, gamma, w_qkv, b_qkv, w_proj, b_proj):
    B, C, T, H, W = x.shape
    hp = jax.lax.Precision.HIGHEST
    nrm = jnp.sqrt(jnp.sum(x * x, axis=1, keepdims=True))
    xn = x / jnp.maximum(nrm, EPS) * (float(C) ** 0.5) * gamma.reshape(1, C, 1, 1, 1)
    y = xn.reshape(B, T, H, W, C)
    qkv = jnp.dot(y, w_qkv, precision=hp) + b_qkv.reshape(3 * C)
    q = qkv[..., :C] * (float(C) ** -0.5)
    k = qkv[..., C:2 * C]
    v = qkv[..., 2 * C:]

    def nbr(L):
        i = jnp.arange(L)
        return jnp.clip(i - 1, 0, L - 3)[:, None] + jnp.arange(3)[None, :]

    it, ih, iw = nbr(T), nbr(H), nbr(W)
    Ti = it[:, None, None, :, None, None]
    Hi = ih[None, :, None, None, :, None]
    Wi = iw[None, None, :, None, None, :]
    kn = k[:, Ti, Hi, Wi, :].reshape(B, T, H, W, 27, C)
    vn = v[:, Ti, Hi, Wi, :].reshape(B, T, H, W, 27, C)
    logits = jnp.einsum('bthwc,bthwnc->bthwn', q, kn, precision=hp)
    attn = jax.nn.softmax(logits, axis=-1)
    out = jnp.einsum('bthwn,bthwnc->bthwc', attn, vn, precision=hp)
    out = jnp.dot(out, w_proj, precision=hp) + b_proj.reshape(C)
    return out.reshape(B, C, T, H, W) + x


# ----------------------------------- main ------------------------------------
if __name__ == "__main__":
    B, C, T, H, W = 2, 32, 4, 8, 8

    key = jax.random.PRNGKey(0)
    ks = jax.random.split(key, 6)
    x = jax.random.normal(ks[0], (B, C, T, H, W), jnp.float32)
    gamma = 1.0 + 0.1 * jax.random.normal(ks[1], (C,), jnp.float32)
    w_qkv = jax.random.normal(ks[2], (C, 3 * C), jnp.float32) * (float(C) ** -0.5)
    b_qkv = 0.1 * jax.random.normal(ks[3], (1, 3 * C), jnp.float32)
    w_proj = jax.random.normal(ks[4], (C, C), jnp.float32) * (float(C) ** -0.5)
    b_proj = 0.1 * jax.random.normal(ks[5], (1, C), jnp.float32)

    out = spatio_temporal_na_block(x, gamma, w_qkv, b_qkv, w_proj, b_proj)
    out = jax.block_until_ready(out)

    ref = reference_forward(x, gamma, w_qkv, b_qkv, w_proj, b_proj)
    np.testing.assert_allclose(np.asarray(out), np.asarray(ref), rtol=1e-2, atol=1e-2)

    print("KERNEL_OK")
</pallas_src>

<mosaic_0001>
module attributes {stable_mosaic.version = 11 : i64} {
  func.func @_rms_kernel(%arg0: i32, %arg1: i32, %arg2: memref<1x32x256xf32, #tpu.memory_space<vmem>>, %arg3: memref<32x1xf32, #tpu.memory_space<vmem>>, %arg4: memref<1x32x256xf32, #tpu.memory_space<vmem>>) attributes {dimension_semantics = [#tpu.dimension_semantics<parallel>, #tpu.dimension_semantics<parallel>], iteration_bounds = array<i64: 2, 1>, scalar_prefetch = 0 : i64, scratch_operands = 0 : i64, tpu.core_type = #tpu.core_type<tc>, window_params = [{transform_indices = @transform_0, window_bounds = array<i64: 1, 32, 256>}, {pipeline_mode = #tpu.pipeline_mode<synchronous>, transform_indices = @transform_1, window_bounds = array<i64: 32, 1>}, {transform_indices = @transform_2, window_bounds = array<i64: 1, 32, 256>}]} {
    %c0 = arith.constant 0 : index
    %c0_0 = arith.constant 0 : index
    %c0_1 = arith.constant 0 : index
    %0 = vector.load %arg2[%c0, %c0_0, %c0_1] : memref<1x32x256xf32, #tpu.memory_space<vmem>>, vector<1x32x256xf32>
    %1 = vector.shape_cast %0 : vector<1x32x256xf32> to vector<32x256xf32>
    %2 = arith.mulf %1, %1 : vector<32x256xf32>
    %cst = arith.constant dense<0.000000e+00> : vector<256xf32>
    %3 = vector.multi_reduction <add>, %2, %cst [0] : vector<32x256xf32> to vector<256xf32>
    %4 = vector.shape_cast %3 : vector<256xf32> to vector<1x256xf32>
    %5 = math.sqrt %4 : vector<1x256xf32>
    %cst_2 = arith.constant 9.99999996E-13 : f32
    %6 = vector.broadcast %cst_2 : f32 to vector<1x256xf32>
    %7 = arith.maximumf %5, %6 : vector<1x256xf32>
    %cst_3 = arith.constant 5.65685415 : f32
    %8 = vector.broadcast %cst_3 : f32 to vector<1x256xf32>
    %9 = arith.divf %8, %7 : vector<1x256xf32>
    %10 = vector.broadcast %9 : vector<1x256xf32> to vector<32x256xf32>
    %11 = arith.mulf %1, %10 : vector<32x256xf32>
    %c0_4 = arith.constant 0 : index
    %c0_5 = arith.constant 0 : index
    %12 = vector.load %arg3[%c0_4, %c0_5] : memref<32x1xf32, #tpu.memory_space<vmem>>, vector<32x1xf32>
    %13 = vector.broadcast %12 : vector<32x1xf32> to vector<32x256xf32>
    %14 = arith.mulf %11, %13 : vector<32x256xf32>
    %c0_6 = arith.constant 0 : index
    %c0_7 = arith.constant 0 : index
    %c0_8 = arith.constant 0 : index
    %15 = vector.load %arg4[%c0_6, %c0_7, %c0_8] : memref<1x32x256xf32, #tpu.memory_space<vmem>>, vector<1x32x256xf32>
    %16 = vector.shape_cast %15 : vector<1x32x256xf32> to vector<32x256xf32>
    %17 = vector.shape_cast %14 : vector<32x256xf32> to vector<1x32x256xf32>
    tpu.vector_store %arg4[%c0_6, %c0_7, %c0_8], %17 {strides = array<i32>} : memref<1x32x256xf32, #tpu.memory_space<vmem>>, vector<1x32x256xf32>,
    return
  }
  func.func @transform_0(%arg0: i32, %arg1: i32) -> (i32, i32, i32) {
    %c0_i32 = arith.constant 0 : i32
    %c0_i32_0 = arith.constant 0 : i32
    return %arg0, %c0_i32, %arg1 : i32, i32, i32
  }
  func.func @transform_1(%arg0: i32, %arg1: i32) -> (i32, i32) {
    %c0_i32 = arith.constant 0 : i32
    %c0_i32_0 = arith.constant 0 : i32
    %c0_i32_1 = arith.constant 0 : i32
    return %c0_i32, %c0_i32_0 : i32, i32
  }
  func.func @transform_2(%arg0: i32, %arg1: i32) -> (i32, i32, i32) {
    %c0_i32 = arith.constant 0 : i32
    %c0_i32_0 = arith.constant 0 : i32
    return %arg0, %c0_i32, %arg1 : i32, i32, i32
  }
}

module attributes {stable_mosaic.version = 11 : i64} {
  func.func @_na_kernel(%arg0: i32, %arg1: memref<1x256x32xf32, #tpu.memory_space<vmem>>, %arg2: memref<1x256x32xf32, #tpu.memory_space<vmem>>, %arg3: memref<256x256xf32, #tpu.memory_space<vmem>>, %arg4: memref<32x32xf32, #tpu.memory_space<vmem>>, %arg5: memref<32x32xf32, #tpu.memory_space<vmem>>, %arg6: memref<32x32xf32, #tpu.memory_space<vmem>>, %arg7: memref<1x32xf32, #tpu.memory_space<vmem>>, %arg8: memref<1x32xf32, #tpu.memory_space<vmem>>, %arg9: memref<1x32xf32, #tpu.memory_space<vmem>>, %arg10: memref<32x32xf32, #tpu.memory_space<vmem>>, %arg11: memref<1x32xf32, #tpu.memory_space<vmem>>, %arg12: memref<1x256x32xf32, #tpu.memory_space<vmem>>) attributes {dimension_semantics = [#tpu.dimension_semantics<parallel>], iteration_bounds = array<i64: 2>, scalar_prefetch = 0 : i64, scratch_operands = 0 : i64, tpu.core_type = #tpu.core_type<tc>, window_params = [{transform_indices = @transform_0, window_bounds = array<i64: 1, 256, 32>}, {transform_indices = @transform_1, window_bounds = array<i64: 1, 256, 32>}, {pipeline_mode = #tpu.pipeline_mode<synchronous>, transform_indices = @transform_2, window_bounds = array<i64: 256, 256>}, {pipeline_mode = #tpu.pipeline_mode<synchronous>, transform_indices = @transform_3, window_bounds = array<i64: 32, 32>}, {pipeline_mode = #tpu.pipeline_mode<synchronous>, transform_indices = @transform_4, window_bounds = array<i64: 32, 32>}, {pipeline_mode = #tpu.pipeline_mode<synchronous>, transform_indices = @transform_5, window_bounds = array<i64: 32, 32>}, {pipeline_mode = #tpu.pipeline_mode<synchronous>, transform_indices = @transform_6, window_bounds = array<i64: 1, 32>}, {pipeline_mode = #tpu.pipeline_mode<synchronous>, transform_indices = @transform_7, window_bounds = array<i64: 1, 32>}, {pipeline_mode = #tpu.pipeline_mode<synchronous>, transform_indices = @transform_8, window_bounds = array<i64: 1, 32>}, {pipeline_mode = #tpu.pipeline_mode<synchronous>, transform_indices = @transform_9, window_bounds = array<i64: 32, 32>}, {pipeline_mode = #tpu.pipeline_mode<synchronous>, transform_indices = @transform_10, window_bounds = array<i64: 1, 32>}, {transform_indices = @transform_11, window_bounds = array<i64: 1, 256, 32>}]} {
    %c0 = arith.constant 0 : index
    %c0_0 = arith.constant 0 : index
    %c0_1 = arith.constant 0 : index
    %0 = vector.load %arg1[%c0, %c0_0, %c0_1] : memref<1x256x32xf32, #tpu.memory_space<vmem>>, vector<1x256x32xf32>
    %1 = vector.shape_cast %0 : vector<1x256x32xf32> to vector<256x32xf32>
    %c0_2 = arith.constant 0 : index
    %c0_3 = arith.constant 0 : index
    %2 = vector.load %arg4[%c0_2, %c0_3] : memref<32x32xf32, #tpu.memory_space<vmem>>, vector<32x32xf32>
    %cst = arith.constant dense<0.000000e+00> : vector<256x32xf32>
    %3 = tpu.matmul %1, %2, %cst {dimension_numbers = #tpu.dot_dimension_numbers<[1], [0], [0], [1], [0, 0, 1, 1], [], []>} : vector<256x32xf32>, vector<32x32xf32>, vector<256x32xf32> -> vector<256x32xf32>
    %c0_4 = arith.constant 0 : index
    %c0_5 = arith.constant 0 : index
    %4 = vector.load %arg7[%c0_4, %c0_5] : memref<1x32xf32, #tpu.memory_space<vmem>>, vector<1x32xf32>
    %5 = vector.broadcast %4 : vector<1x32xf32> to vector<256x32xf32>
    %6 = arith.addf %3, %5 : vector<256x32xf32>
    %cst_6 = arith.constant 0.176776692 : f32
    %7 = vector.broadcast %cst_6 : f32 to vector<256x32xf32>
    %8 = arith.mulf %6, %7 : vector<256x32xf32>
    %c0_7 = arith.constant 0 : index
    %c0_8 = arith.constant 0 : index
    %9 = vector.load %arg5[%c0_7, %c0_8] : memref<32x32xf32, #tpu.memory_space<vmem>>, vector<32x32xf32>
    %cst_9 = arith.constant dense<0.000000e+00> : vector<256x32xf32>
    %10 = tpu.matmul %1, %9, %cst_9 {dimension_numbers = #tpu.dot_dimension_numbers<[1], [0], [0], [1], [0, 0, 1, 1], [], []>} : vector<256x32xf32>, vector<32x32xf32>, vector<256x32xf32> -> vector<256x32xf32>
    %c0_10 = arith.constant 0 : index
    %c0_11 = arith.constant 0 : index
    %11 = vector.load %arg8[%c0_10, %c0_11] : memref<1x32xf32, #tpu.memory_space<vmem>>, vector<1x32xf32>
    %12 = vector.broadcast %11 : vector<1x32xf32> to vector<256x32xf32>
    %13 = arith.addf %10, %12 : vector<256x32xf32>
    %c0_12 = arith.constant 0 : index
    %c0_13 = arith.constant 0 : index
    %14 = vector.load %arg6[%c0_12, %c0_13] : memref<32x32xf32, #tpu.memory_space<vmem>>, vector<32x32xf32>
    %cst_14 = arith.constant dense<0.000000e+00> : vector<256x32xf32>
    %15 = tpu.matmul %1, %14, %cst_14 {dimension_numbers = #tpu.dot_dimension_numbers<[1], [0], [0], [1], [0, 0, 1, 1], [], []>} : vector<256x32xf32>, vector<32x32xf32>, vector<256x32xf32> -> vector<256x32xf32>
    %c0_15 = arith.constant 0 : index
    %c0_16 = arith.constant 0 : index
    %16 = vector.load %arg9[%c0_15, %c0_16] : memref<1x32xf32, #tpu.memory_space<vmem>>, vector<1x32xf32>
    %17 = vector.broadcast %16 : vector<1x32xf32> to vector<256x32xf32>
    %18 = arith.addf %15, %17 : vector<256x32xf32>
    %cst_17 = arith.constant dense<0.000000e+00> : vector<256x256xf32>
    %19 = tpu.matmul %8, %13, %cst_17 {dimension_numbers = #tpu.dot_dimension_numbers<[1], [1], [0], [0], [0, 0, 1, 0], [], []>} : vector<256x32xf32>, vector<256x32xf32>, vector<256x256xf32> -> vector<256x256xf32>
    %c0_18 = arith.constant 0 : index
    %c0_19 = arith.constant 0 : index
    %20 = vector.load %arg3[%c0_18, %c0_19] : memref<256x256xf32, #tpu.memory_space<vmem>>, vector<256x256xf32>
    %21 = arith.addf %19, %20 : vector<256x256xf32>
    %cst_20 = arith.constant dense<0xFF800000> : vector<256xf32>
    %22 = vector.multi_reduction <maximumf>, %21, %cst_20 [1] : vector<256x256xf32> to vector<256xf32>
    %23 = vector.shape_cast %22 : vector<256xf32> to vector<256x1xf32>
    %24 = vector.broadcast %23 : vector<256x1xf32> to vector<256x256xf32>
    %25 = arith.subf %21, %24 : vector<256x256xf32>
    %26 = math.exp %25 : vector<256x256xf32>
    %cst_21 = arith.constant dense<0.000000e+00> : vector<256xf32>
    %27 = vector.multi_reduction <add>, %26, %cst_21 [1] : vector<256x256xf32> to vector<256xf32>
    %28 = vector.shape_cast %27 : vector<256xf32> to vector<256x1xf32>
    %cst_22 = arith.constant dense<0.000000e+00> : vector<256x32xf32>
    %29 = tpu.matmul %26, %18, %cst_22 {dimension_numbers = #tpu.dot_dimension_numbers<[1], [0], [0], [1], [0, 0, 1, 1], [], []>} : vector<256x256xf32>, vector<256x32xf32>, vector<256x32xf32> -> vector<256x32xf32>
    %30 = tpu.reciprocal %28 {approx = true} : vector<256x1xf32> -> vector<256x1xf32>
    %31 = vector.broadcast %30 : vector<256x1xf32> to vector<256x32xf32>
    %32 = arith.mulf %29, %31 : vector<256x32xf32>
    %c0_23 = arith.constant 0 : index
    %c0_24 = arith.constant 0 : index
    %33 = vector.load %arg10[%c0_23, %c0_24] : memref<32x32xf32, #tpu.memory_space<vmem>>, vector<32x32xf32>
    %cst_25 = arith.constant dense<0.000000e+00> : vector<256x32xf32>
    %34 = tpu.matmul %32, %33, %cst_25 {dimension_numbers = #tpu.dot_dimension_numbers<[1], [0], [0], [1], [0, 0, 1, 1], [], []>} : vector<256x32xf32>, vector<32x32xf32>, vector<256x32xf32> -> vector<256x32xf32>
    %c0_26 = arith.constant 0 : index
    %c0_27 = arith.constant 0 : index
    %35 = vector.load %arg11[%c0_26, %c0_27] : memref<1x32xf32, #tpu.memory_space<vmem>>, vector<1x32xf32>
    %36 = vector.broadcast %35 : vector<1x32xf32> to vector<256x32xf32>
    %37 = arith.addf %34, %36 : vector<256x32xf32>
    %c0_28 = arith.constant 0 : index
    %c0_29 = arith.constant 0 : index
    %c0_30 = arith.constant 0 : index
    %38 = vector.load %arg2[%c0_28, %c0_29, %c0_30] : memref<1x256x32xf32, #tpu.memory_space<vmem>>, vector<1x256x32xf32>
    %39 = vector.shape_cast %38 : vector<1x256x32xf32> to vector<256x32xf32>
    %40 = arith.addf %37, %39 : vector<256x32xf32>
    %c0_31 = arith.constant 0 : index
    %c0_32 = arith.constant 0 : index
    %c0_33 = arith.constant 0 : index
    %41 = vector.load %arg12[%c0_31, %c0_32, %c0_33] : memref<1x256x32xf32, #tpu.memory_space<vmem>>, vector<1x256x32xf32>
    %42 = vector.shape_cast %41 : vector<1x256x32xf32> to vector<256x32xf32>
    %43 = vector.shape_cast %40 : vector<256x32xf32> to vector<1x256x32xf32>
    tpu.vector_store %arg12[%c0_31, %c0_32, %c0_33], %43 {strides = array<i32>} : memref<1x256x32xf32, #tpu.memory_space<vmem>>, vector<1x256x32xf32>,
    return
  }
  func.func @transform_0(%arg0: i32) -> (i32, i32, i32) {
    %c0_i32 = arith.constant 0 : i32
    %c0_i32_0 = arith.constant 0 : i32
    %c0_i32_1 = arith.constant 0 : i32
    return %arg0, %c0_i32, %c0_i32_0 : i32, i32, i32
  }
  func.func @transform_1(%arg0: i32) -> (i32, i32, i32) {
    %c0_i32 = arith.constant 0 : i32
    %c0_i32_0 = arith.constant 0 : i32
    %c0_i32_1 = arith.constant 0 : i32
    return %arg0, %c0_i32, %c0_i32_0 : i32, i32, i32
  }
  func.func @transform_2(%arg0: i32) -> (i32, i32) {
    %c0_i32 = arith.constant 0 : i32
    %c0_i32_0 = arith.constant 0 : i32
    %c0_i32_1 = arith.constant 0 : i32
    return %c0_i32, %c0_i32_0 : i32, i32
  }
  func.func @transform_3(%arg0: i32) -> (i32, i32) {
    %c0_i32 = arith.constant 0 : i32
    %c0_i32_0 = arith.constant 0 : i32
    %c0_i32_1 = arith.constant 0 : i32
    return %c0_i32, %c0_i32_0 : i32, i32
  }
  func.func @transform_4(%arg0: i32) -> (i32, i32) {
    %c0_i32 = arith.constant 0 : i32
    %c0_i32_0 = arith.constant 0 : i32
    %c0_i32_1 = arith.constant 0 : i32
    return %c0_i32, %c0_i32_0 : i32, i32
  }
  func.func @transform_5(%arg0: i32) -> (i32, i32) {
    %c0_i32 = arith.constant 0 : i32
    %c0_i32_0 = arith.constant 0 : i32
    %c0_i32_1 = arith.constant 0 : i32
    return %c0_i32, %c0_i32_0 : i32, i32
  }
  func.func @transform_6(%arg0: i32) -> (i32, i32) {
    %c0_i32 = arith.constant 0 : i32
    %c0_i32_0 = arith.constant 0 : i32
    %c0_i32_1 = arith.constant 0 : i32
    return %c0_i32, %c0_i32_0 : i32, i32
  }
  func.func @transform_7(%arg0: i32) -> (i32, i32) {
    %c0_i32 = arith.constant 0 : i32
    %c0_i32_0 = arith.constant 0 : i32
    %c0_i32_1 = arith.constant 0 : i32
    return %c0_i32, %c0_i32_0 : i32, i32
  }
  func.func @transform_8(%arg0: i32) -> (i32, i32) {
    %c0_i32 = arith.constant 0 : i32
    %c0_i32_0 = arith.constant 0 : i32
    %c0_i32_1 = arith.constant 0 : i32
    return %c0_i32, %c0_i32_0 : i32, i32
  }
  func.func @transform_9(%arg0: i32) -> (i32, i32) {
    %c0_i32 = arith.constant 0 : i32
    %c0_i32_0 = arith.constant 0 : i32
    %c0_i32_1 = arith.constant 0 : i32
    return %c0_i32, %c0_i32_0 : i32, i32
  }
  func.func @transform_10(%arg0: i32) -> (i32, i32) {
    %c0_i32 = arith.constant 0 : i32
    %c0_i32_0 = arith.constant 0 : i32
    %c0_i32_1 = arith.constant 0 : i32
    return %c0_i32, %c0_i32_0 : i32, i32
  }
  func.func @transform_11(%arg0: i32) -> (i32, i32, i32) {
    %c0_i32 = arith.constant 0 : i32
    %c0_i32_0 = arith.constant 0 : i32
    %c0_i32_1 = arith.constant 0 : i32
    return %arg0, %c0_i32, %c0_i32_0 : i32, i32, i32
  }
}

</mosaic_0001>

<bundles_post_ra>
// kernel: _forward.2
= control target key start
LH: loop header
LB: loop body
LE: loop exit
PB: predicated region body
PF: predicated region fallthrough
CT: control target
= control target key end

     0   :  { %s460_s9 = smov 0   ;;  %s462_s10 = smov 0   ;;  %s522_s0 = inlined_call_operand.vmem [shape: f32[2,32,256], index: 0, kind: input, shape index: {}]   ;;  %s523_s1 = inlined_call_operand.vmem [shape: f32[32,1], index: 1, kind: input, shape index: {}]   ;;  %s524_s2 = inlined_call_operand.vmem [shape: f32[2,32,256], index: 2, kind: output, shape index: {}]  }
   0x1   :  { %s464_s11 = smov 0  }
   0x2 LB: > { %s24_s12 = sadd.s32 1, %s438_s10  ;;  %p376_p0 = scmp.ge.s32.totalorder %s442_s11, 1  ;;  %s442_s11 = sphi %s464_s11, %s12_s11   ;;  %s438_s10 = sphi %s462_s10, %s526_s10   ;;  %s434_s9 = sphi %s460_s9, %s525_s9  }
   0x3   : > { %p26_p1 = scmp.ge.s32.totalorder %s24_s12, 2  ;;  %p133_p2 = scmp.lt.s32.totalorder %s442_s11, 3 }
   0x5   : > { %s528_s12 = smov (%p26_p1, %s24_s12), 0  ;;  %p134_p3 = pnand %p376_p0, %p133_p2 }
   0x6   : > { %p164_p4 = scmp.lt.s32.totalorder (!%p134_p3), %s434_s9, 1 }
   0x7   : > { %137 = sbr.rel (%p134_p3) target bundleno = 146 (0x92), region = 28 }
   0xc   : > { %v247_v0 = vld [vmem:[%s523_s1 + $0x10] sm:$0xff]  ;;  %v245_v1 = vld [vmem:[%s523_s1] sm:$0xff]  ;;  %v444_v2 = vmov 0   ;;  %v248_v3 = vld [vmem:[%s523_s1 + $0x18] sm:$0xff]  ;;  %s530_s9 = smov (!%p164_p4, %s434_s9), 1 }
   0xd   : > { %411 = vset.pattern.permute.xlu1 %v444_v2  ;;  %410 = vset.pattern.permute.xlu0 %v444_v2  ;;  %v246_v4 = vld [vmem:[%s523_s1 + $0x8] sm:$0xff]  ;;  %s383_s21 = sshll.u32 %s530_s9, 6 }
   0xe   : > { %261 = vperm.xlu1 %411, %v247_v0   ;;  %251 = vperm.xlu0 %410, %v245_v1   ;;  %s171_s24 = scalar_lea.vmem %s522_s0, %s383_s21  ;;  %s181_s27 = scalar_lea.vmem %s524_s2, %s383_s21 }
   0xf   : > { %v183_v5 = vld [vmem:[%s171_s24] sm:$0xff]  ;;  %v498_v6 = vld [vmem:[%s171_s24 + $0x10] sm:$0xff]  ;;  %v184_v7 = vld [vmem:[%s171_s24 + $0x8] sm:$0xff] }
  0x10   : > { %v500_v8 = vld [vmem:[%s171_s24 + $0x18] sm:$0xff]  ;;  %v191_v9 = vmul.f32 %v183_v5, %v183_v5  ;;  %v193_v10 = vmul.f32 %v498_v6, %v498_v6  ;;  %v187_v11 = vld [vmem:[%s171_s24 + $0x20] sm:$0xff]  ;;  %v192_v12 = vmul.f32 %v184_v7, %v184_v7  ;;  %v188_v14 = vld [vmem:[%s171_s24 + $0x28] sm:$0xff] }
  0x11   : > { %v194_v13 = vmul.f32 %v500_v8, %v500_v8  ;;  %v195_v15 = vmul.f32 %v187_v11, %v187_v11  ;;  %v189_v17 = vld [vmem:[%s171_s24 + $0x30] sm:$0xff]  ;;  %v196_v18 = vmul.f32 %v188_v14, %v188_v14  ;;  %v190_v20 = vld [vmem:[%s171_s24 + $0x38] sm:$0xff] }
  0x12   : > { %266 = vperm.xlu1 %411, %v248_v3   ;;  %256 = vperm.xlu0 %410, %v246_v4   ;;  %v199_v16 = vadd.f32 %v193_v10, %v191_v9  ;;  %v197_v21 = vmul.f32 %v189_v17, %v189_v17  ;;  %v198_v23 = vmul.f32 %v190_v20, %v190_v20 }
  0x13   : > { %v208_v19 = vadd.f32 %v194_v13, %v192_v12 }
  0x14   : > { %v200_v22 = vadd.f32 %v199_v16, %v195_v15 }
  0x15   : > { %v209_v24 = vadd.f32 %v208_v19, %v196_v18 }
  0x16   : > { %v201_v25 = vadd.f32 %v200_v22, %v197_v21 }
  0x17   : > { %v210_v26 = vadd.f32 %v209_v24, %v198_v23 }
  0x18   : > { %v202_v27 = vrot.slane %v201_v25, 4 }
  0x19   : > { %v211_v28 = vrot.slane %v210_v26, 4 }
  0x1a   : > { %v203_v29 = vadd.f32 %v202_v27, %v201_v25 }
  0x1b   : > { %v212_v30 = vadd.f32 %v211_v28, %v210_v26 }
  0x1c   : > { %v204_v31 = vrot.slane %v203_v29, 2 }
  0x1d   : > { %v213_v32 = vrot.slane %v212_v30, 2 }
  0x1e   : > { %v205_v33 = vadd.f32 %v204_v31, %v203_v29 }
  0x1f   : > { %v214_v34 = vadd.f32 %v213_v32, %v212_v30 }
  0x20   : > { %v206_v35 = vrot.slane %v205_v33, 1 }
  0x21   : > { %v215_v36 = vrot.slane %v214_v34, 1 }
  0x22   : > { %v207_v37 = vadd.f32 %v206_v35, %v205_v33 }
  0x23   : > { %v216_v38 = vadd.f32 %v215_v36, %v214_v34 }
  0x24   : > { %412 = vrsqrt.f32 %v207_v37  ;;  %vm219_vm0 = vcmp.eq.f32.partialorder %v207_v37, inf  ;;  %v222_v43 = vand.u32 2147483648, %v207_v37  ;;  %vm221_vm2 = vcmp.eq.f32.partialorder %v207_v37, 0.0 }
  0x25   : > { %414 = vrsqrt.f32 %v216_v38  ;;  %vm226_vm1 = vcmp.eq.f32.partialorder %v216_v38, inf  ;;  %v229_v45 = vand.u32 2147483648, %v216_v38  ;;  %vm228_vm3 = vcmp.eq.f32.partialorder %v216_v38, 0.0 }
  0x31   : > { %v413_v39 = vpop.eup %412 }
  0x32   : > { %v415_v40 = vpop.eup %414  ;;  %v218_v41 = vmul.f32 %v413_v39, %v207_v37 }
  0x33   : > { %v225_v42 = vmul.f32 %v415_v40, %v216_v38 }
  0x34   : > { %v220_v44 = vsel %vm219_vm0, %v207_v37, %v218_v41 }
  0x35   : > { %v227_v46 = vsel %vm226_vm1, %v216_v38, %v225_v42  ;;  %v223_v47 = vsel %vm221_vm2, %v222_v43, %v220_v44 }
  0x36   : > { %v230_v48 = vsel %vm228_vm3, %v229_v45, %v227_v46  ;;  %v231_v49 = vmax.f32 %v223_v47, 1e-12 }
  0x37   : > { %v232_v50 = vmax.f32 %v230_v48, 1e-12 }
  0x38   : > { %416 = vrcp.f32 %v231_v49 }
  0x39   : > { %418 = vrcp.f32 %v232_v50 }
  0x45   : > { %v417_v51 = vpop.eup %416 }
  0x46   : > { %v419_v52 = vpop.eup %418  ;;  %v234_v53 = vmul.f32 5.656854, %v417_v51 }
  0x47   : > { %v236_v54 = vmul.f32 5.656854, %v419_v52 }
  0x48   : > { %v241_v55 = vmul.f32 %v234_v53, %v187_v11  ;;  %v237_v57 = vmul.f32 %v234_v53, %v183_v5  ;;  %v243_v61 = vmul.f32 %v234_v53, %v189_v17  ;;  %v239_v63 = vmul.f32 %v234_v53, %v498_v6 }
  0x49   : > { %v242_v56 = vmul.f32 %v236_v54, %v188_v14  ;;  %v238_v58 = vmul.f32 %v236_v54, %v184_v7  ;;  %v244_v62 = vmul.f32 %v236_v54, %v190_v20  ;;  %v240_v0 = vmul.f32 %v236_v54, %v500_v8 }
  0x89   : > { %v262_v59 = vpop.permute.xlu1 %261  ;;  %v252_v60 = vpop.permute.xlu0 %251 }
  0x8a   : > { %v273_v1 = vmul.f32 %v262_v59, %v241_v55  ;;  %v274_v2 = vmul.f32 %v262_v59, %v242_v56  ;;  %v269_v3 = vmul.f32 %v252_v60, %v237_v57  ;;  %v270_v4 = vmul.f32 %v252_v60, %v238_v58 }
  0x8c   : > { %281 = vst [vmem:[%s181_s27 + $0x20] sm:$0xff] %v273_v1  ;;  %282 = vst [vmem:[%s181_s27 + $0x28] sm:$0xff] %v274_v2 }
  0x8d   : > { %277 = vst [vmem:[%s181_s27] sm:$0xff] %v269_v3  ;;  %278 = vst [vmem:[%s181_s27 + $0x8] sm:$0xff] %v270_v4  ;;  %v267_v5 = vpop.permute.xlu1 %266  ;;  %v257_v7 = vpop.permute.xlu0 %256 }
  0x8e   : > { %v275_v9 = vmul.f32 %v267_v5, %v243_v61  ;;  %v276_v10 = vmul.f32 %v267_v5, %v244_v62  ;;  %v271_v11 = vmul.f32 %v257_v7, %v239_v63  ;;  %v272_v12 = vmul.f32 %v257_v7, %v240_v0 }
  0x90   : > { %283 = vst [vmem:[%s181_s27 + $0x30] sm:$0xff] %v275_v9  ;;  %284 = vst [vmem:[%s181_s27 + $0x38] sm:$0xff] %v276_v10 }
  0x91   : > { %279 = vst [vmem:[%s181_s27 + $0x10] sm:$0xff] %v271_v11  ;;  %280 = vst [vmem:[%s181_s27 + $0x18] sm:$0xff] %v272_v12 }
  0x92 PF: > { %s12_s11 = sadd.s32 1, %s442_s11   ;;  %s525_s9 = smov %s438_s10 }
  0x93   : > { %p9_p5 = scmp.ge.s32.totalorder %s12_s11, 4   ;;  %s526_s10 = smov %s528_s12 }
  0x95   :  { %11 = sbr.rel (!%p9_p5) target bundleno = 2 (0x2), region = 58 }

// kernel: _forward.3
= control target key start
LH: loop header
LB: loop body
LE: loop exit
PB: predicated region body
PF: predicated region fallthrough
CT: control target
= control target key end

     0   :  { %s3903_s17 = smov 0   ;;  %s5231_s0 = inlined_call_operand.vmem [shape: f32[2,256,32], index: 0, kind: input, shape index: {}]   ;;  %s5232_s1 = inlined_call_operand.vmem [shape: f32[2,256,32], index: 1, kind: input, shape index: {}]   ;;  %s5233_s2 = inlined_call_operand.vmem [shape: f32[256,256], index: 2, kind: input, shape index: {}]   ;;  %s5234_s3 = inlined_call_operand.vmem [shape: f32[32,32], index: 3, kind: input, shape index: {}]   ;;  %s5235_s4 = inlined_call_operand.vmem [shape: f32[32,32], index: 4, kind: input, shape index: {}]   ;;  %s5236_s5 = inlined_call_operand.vmem [shape: f32[32,32], index: 5, kind: input, shape index: {}]   ;;  %s5237_s6 = inlined_call_operand.vmem [shape: f32[1,32], index: 6, kind: input, shape index: {}]   ;;  %s5238_s7 = inlined_call_operand.vmem [shape: f32[1,32], index: 7, kind: input, shape index: {}]   ;;  %s5239_s8 = inlined_call_operand.vmem [shape: f32[1,32], index: 8, kind: input, shape index: {}]   ;;  %s5240_s9 = inlined_call_operand.vmem [shape: f32[32,32], index: 9, kind: input, shape index: {}]   ;;  %s5241_s10 = inlined_call_operand.vmem [shape: f32[1,32], index: 10, kind: input, shape index: {}]   ;;  %s5242_s11 = inlined_call_operand.vmem [shape: f32[2,256,32], index: 11, kind: output, shape index: {}]  }
   0x1 LB: > { %s2957_s18 = sadd.s32 4294967295, %s3840_s17   ;;  %p2961_p0 = scmp.ge.s32.totalorder %s3840_s17, 1  ;;  %s3840_s17 = sphi %s3903_s17, %s21_s17  }
   0x2   : > { %p347_p1 = scmp.lt.s32.totalorder %s3840_s17, 3 }
   0x4   : > { %p348_p2 = pnand %p2961_p0, %p347_p1 }
   0x6   : > { %351 = sbr.rel (%p348_p2) target bundleno = 1215 (0x4bf), region = 64 }
   0xb   : > { %v807_v0 = vld [vmem:[%s5235_s4 + $0x18] sm:$0xff]  ;;  %v806_v1 = vld [vmem:[%s5235_s4 + $0x10] sm:$0xff]  ;;  %p392_p3 = scmp.lt.s32.totalorder %s2957_s18, 1  ;;  %v805_v4 = vld [vmem:[%s5235_s4 + $0x8] sm:$0xff]  ;;  %vm450_vm0 = vcmask 261120  }
   0xc   : > { %3465 = vmatprep.subr.mxu1 %v807_v0  ;;  %v442_v2 = vld [vmem:[%s5234_s3 + $0x18] sm:$0xff]  ;;  %v441_v3 = vld [vmem:[%s5234_s3 + $0x10] sm:$0xff]  ;;  %v440_v5 = vld [vmem:[%s5234_s3 + $0x8] sm:$0xff] }
   0xd   : > { %3466 = vmatpush3.msra.mxu1 %v807_v0  ;;  %s5283_s18 = smov (!%p392_p3, %s2957_s18), 1  ;;  %3409 = vmatprep.subr.mxu0 %v442_v2  ;;  %v804_v6 = vld [vmem:[%s5235_s4] sm:$0xff]  ;;  %v1043_v41 = vld [vmem:[%s5236_s5 + $0x18] sm:$0xff]  ;;  %v1042_v45 = vld [vmem:[%s5236_s5 + $0x10] sm:$0xff] }
   0xe   : > { %3467 = vmatprep.subr.mxu1 %v806_v1  ;;  %3410 = vmatpush3.msra.mxu0 %v442_v2  ;;  %s3932_s14 = sshll.u32 %s5283_s18, 8  ;;  %v439_v9 = vld [vmem:[%s5234_s3] sm:$0xff]  ;;  %v1041_v47 = vld [vmem:[%s5236_s5 + $0x8] sm:$0xff] }
   0xf   : > { %3468 = vmatpush3.msra.mxu1 %v806_v1  ;;  %3411 = vmatprep.subr.mxu0 %v441_v3  ;;  %s3938_s19 = scalar_lea.vmem %s5231_s0, %s3932_s14  ;;  %v4181_v44 = vld [vmem:[%s5237_s6] ss:$0 sm:$0xff]  ;;  %s5087_s20 = scalar_lea.vmem %s5232_s1, %s3932_s14 }
  0x10   : > { %3469 = vmatprep.subr.mxu1 %v805_v4  ;;  %3412 = vmatpush3.msra.mxu0 %v441_v3  ;;  %v3941_v7 = vld [vmem:[%s3938_s19] sm:$0xff]  ;;  %v3944_v8 = vld [vmem:[%s3938_s19 + $0x8] sm:$0xff]  ;;  %v3952_v10 = vld [vmem:[%s3938_s19 + $0x10] sm:$0xff]  ;;  %s5100_s25 = scalar_lea.vmem %s5242_s11, %s3932_s14 }
  0x11   : > { %3470 = vmatpush3.msra.mxu1 %v805_v4  ;;  %3413 = vmatprep.subr.mxu0 %v440_v5  ;;  %v3959_v11 = vld [vmem:[%s3938_s19 + $0x18] sm:$0xff]  ;;  %v3962_v12 = vld [vmem:[%s3938_s19 + $0x20] sm:$0xff]  ;;  %v3975_v13 = vld [vmem:[%s3938_s19 + $0x28] sm:$0xff] }
  0x12   : > { %3471 = vmatprep.subr.mxu1 %v804_v6  ;;  %3473 = vmatprep.mubr.msk.f32.mxu1 %vm450_vm0, %v3941_v7  ;;  %v3978_v14 = vld [vmem:[%s3938_s19 + $0x30] sm:$0xff]  ;;  %v3989_v15 = vld [vmem:[%s3938_s19 + $0x38] sm:$0xff]  ;;  %v3992_v16 = vld [vmem:[%s3938_s19 + $0x40] sm:$0xff] }
  0x13   : > { %3472 = vmatpush3.msra.mxu1 %v804_v6  ;;  %3414 = vmatpush3.msra.mxu0 %v440_v5  ;;  %v4003_v17 = vld [vmem:[%s3938_s19 + $0x48] sm:$0xff]  ;;  %v4006_v18 = vld [vmem:[%s3938_s19 + $0x50] sm:$0xff]  ;;  %v4017_v19 = vld [vmem:[%s3938_s19 + $0x58] sm:$0xff] }
  0x14   : > { %3474 = vmatmul.mubr.msk.f32.vlgmr.msra.gmra.mxu1 %vm450_vm0, %v3944_v8  ;;  %3415 = vmatprep.subr.mxu0 %v439_v9  ;;  %v4020_v20 = vld [vmem:[%s3938_s19 + $0x60] sm:$0xff]  ;;  %v4031_v21 = vld [vmem:[%s3938_s19 + $0x68] sm:$0xff]  ;;  %v4034_v22 = vld [vmem:[%s3938_s19 + $0x70] sm:$0xff] }
  0x15   : > { %3476 = vmatprep.mubr.msk.f32.mxu1 %vm450_vm0, %v3952_v10  ;;  %3416 = vmatpush3.msra.mxu0 %v439_v9  ;;  %v4045_v23 = vld [vmem:[%s3938_s19 + $0x78] sm:$0xff]  ;;  %v4048_v24 = vld [vmem:[%s3938_s19 + $0x80] sm:$0xff]  ;;  %v4059_v25 = vld [vmem:[%s3938_s19 + $0x88] sm:$0xff] }
  0x16   : > { %3417 = vmatprep.mubr.msk.f32.mxu0 %vm450_vm0, %v3941_v7  ;;  %v4062_v26 = vld [vmem:[%s3938_s19 + $0x90] sm:$0xff]  ;;  %v4073_v27 = vld [vmem:[%s3938_s19 + $0x98] sm:$0xff]  ;;  %v4076_v28 = vld [vmem:[%s3938_s19 + $0xa0] sm:$0xff]  ;;  %3521 = vmatprep.subr.mxu0 %v1043_v41 }
  0x17   : > { %3418 = vmatmul.mubr.msk.f32.vlgmr.msra.gmra.mxu0 %vm450_vm0, %v3944_v8  ;;  %v4087_v29 = vld [vmem:[%s3938_s19 + $0xa8] sm:$0xff]  ;;  %v4090_v30 = vld [vmem:[%s3938_s19 + $0xb0] sm:$0xff]  ;;  %v4101_v31 = vld [vmem:[%s3938_s19 + $0xb8] sm:$0xff] }
  0x18   : > { %3477 = vmatmul.mubr.msk.f32.gmra.mxu1 %vm450_vm0, %v3959_v11  ;;  %3420 = vmatprep.mubr.msk.f32.mxu0 %vm450_vm0, %v3952_v10  ;;  %v4104_v32 = vld [vmem:[%s3938_s19 + $0xc0] sm:$0xff]  ;;  %v4115_v33 = vld [vmem:[%s3938_s19 + $0xc8] sm:$0xff]  ;;  %v4118_v34 = vld [vmem:[%s3938_s19 + $0xd0] sm:$0xff] }
  0x19   : > { %3479 = vmatprep.mubr.msk.f32.mxu1 %vm450_vm0, %v3962_v12  ;;  %v4129_v35 = vld [vmem:[%s3938_s19 + $0xd8] sm:$0xff]  ;;  %v4132_v36 = vld [vmem:[%s3938_s19 + $0xe0] sm:$0xff]  ;;  %v4143_v37 = vld [vmem:[%s3938_s19 + $0xe8] sm:$0xff]  ;;  %3522 = vmatpush3.msra.mxu0 %v1043_v41 }
  0x1a   : > { %v4146_v38 = vld [vmem:[%s3938_s19 + $0xf0] sm:$0xff]  ;;  %v4157_v39 = vld [vmem:[%s3938_s19 + $0xf8] sm:$0xff]  ;;  %3523 = vmatprep.subr.mxu0 %v1042_v45  ;;  %v1040_v53 = vld [vmem:[%s5236_s5] sm:$0xff] }
  0x1b   : > { %3421 = vmatmul.mubr.msk.f32.gmra.mxu0 %vm450_vm0, %v3959_v11 }
  0x1c   : > { %3480 = vmatmul.mubr.msk.f32.gmra.mxu1 %vm450_vm0, %v3975_v13  ;;  %3423 = vmatprep.mubr.msk.f32.mxu0 %vm450_vm0, %v3962_v12 }
  0x1d   : > { %3482 = vmatprep.mubr.msk.f32.mxu1 %vm450_vm0, %v3978_v14  ;;  %3524 = vmatpush3.msra.mxu0 %v1042_v45 }
  0x1e   : > { %3525 = vmatprep.subr.mxu0 %v1041_v47 }
  0x1f   : > { %3424 = vmatmul.mubr.msk.f32.gmra.mxu0 %vm450_vm0, %v3975_v13 }
  0x20   : > { %3483 = vmatmul.mubr.msk.f32.gmra.mxu1 %vm450_vm0, %v3989_v15  ;;  %3426 = vmatprep.mubr.msk.f32.mxu0 %vm450_vm0, %v3978_v14 }
  0x21   : > { %3485 = vmatprep.mubr.msk.f32.mxu1 %vm450_vm0, %v3992_v16  ;;  %3526 = vmatpush3.msra.mxu0 %v1041_v47 }
  0x22   : > { %3527 = vmatprep.subr.mxu0 %v1040_v53 }
  0x23   : > { %3427 = vmatmul.mubr.msk.f32.gmra.mxu0 %vm450_vm0, %v3989_v15 }
  0x24   : > { %3486 = vmatmul.mubr.msk.f32.gmra.mxu1 %vm450_vm0, %v4003_v17  ;;  %3429 = vmatprep.mubr.msk.f32.mxu0 %vm450_vm0, %v3992_v16 }
  0x25   : > { %3488 = vmatprep.mubr.msk.f32.mxu1 %vm450_vm0, %v4006_v18  ;;  %3528 = vmatpush3.msra.mxu0 %v1040_v53 }
  0x27   : > { %3430 = vmatmul.mubr.msk.f32.gmra.mxu0 %vm450_vm0, %v4003_v17 }
  0x28   : > { %3489 = vmatmul.mubr.msk.f32.gmra.mxu1 %vm450_vm0, %v4017_v19  ;;  %3432 = vmatprep.mubr.msk.f32.mxu0 %vm450_vm0, %v4006_v18 }
  0x29   : > { %3491 = vmatprep.mubr.msk.f32.mxu1 %vm450_vm0, %v4020_v20 }
  0x2b   : > { %3433 = vmatmul.mubr.msk.f32.gmra.mxu0 %vm450_vm0, %v4017_v19 }
  0x2c   : > { %3492 = vmatmul.mubr.msk.f32.gmra.mxu1 %vm450_vm0, %v4031_v21  ;;  %3435 = vmatprep.mubr.msk.f32.mxu0 %vm450_vm0, %v4020_v20 }
  0x2d   : > { %3494 = vmatprep.mubr.msk.f32.mxu1 %vm450_vm0, %v4034_v22 }
  0x2f   : > { %3436 = vmatmul.mubr.msk.f32.gmra.mxu0 %vm450_vm0, %v4031_v21 }
  0x30   : > { %3495 = vmatmul.mubr.msk.f32.gmra.mxu1 %vm450_vm0, %v4045_v23  ;;  %3438 = vmatprep.mubr.msk.f32.mxu0 %vm450_vm0, %v4034_v22 }
  0x31   : > { %3497 = vmatprep.mubr.msk.f32.mxu1 %vm450_vm0, %v4048_v24 }
  0x33   : > { %3439 = vmatmul.mubr.msk.f32.gmra.mxu0 %vm450_vm0, %v4045_v23 }
  0x34   : > { %3498 = vmatmul.mubr.msk.f32.gmra.mxu1 %vm450_vm0, %v4059_v25  ;;  %3441 = vmatprep.mubr.msk.f32.mxu0 %vm450_vm0, %v4048_v24 }
  0x35   : > { %3500 = vmatprep.mubr.msk.f32.mxu1 %vm450_vm0, %v4062_v26 }
  0x37   : > { %3442 = vmatmul.mubr.msk.f32.gmra.mxu0 %vm450_vm0, %v4059_v25 }
  0x38   : > { %3501 = vmatmul.mubr.msk.f32.gmra.mxu1 %vm450_vm0, %v4073_v27  ;;  %3444 = vmatprep.mubr.msk.f32.mxu0 %vm450_vm0, %v4062_v26 }
  0x39   : > { %3503 = vmatprep.mubr.msk.f32.mxu1 %vm450_vm0, %v4076_v28 }
  0x3b   : > { %3445 = vmatmul.mubr.msk.f32.gmra.mxu0 %vm450_vm0, %v4073_v27 }
  0x3c   : > { %3504 = vmatmul.mubr.msk.f32.gmra.mxu1 %vm450_vm0, %v4087_v29  ;;  %3447 = vmatprep.mubr.msk.f32.mxu0 %vm450_vm0, %v4076_v28 }
  0x3d   : > { %3506 = vmatprep.mubr.msk.f32.mxu1 %vm450_vm0, %v4090_v30 }
  0x3f   : > { %3448 = vmatmul.mubr.msk.f32.gmra.mxu0 %vm450_vm0, %v4087_v29 }
  0x40   : > { %3507 = vmatmul.mubr.msk.f32.gmra.mxu1 %vm450_vm0, %v4101_v31  ;;  %3450 = vmatprep.mubr.msk.f32.mxu0 %vm450_vm0, %v4090_v30 }
  0x41   : > { %3509 = vmatprep.mubr.msk.f32.mxu1 %vm450_vm0, %v4104_v32 }
  0x43   : > { %3451 = vmatmul.mubr.msk.f32.gmra.mxu0 %vm450_vm0, %v4101_v31 }
  0x44   : > { %3510 = vmatmul.mubr.msk.f32.gmra.mxu1 %vm450_vm0, %v4115_v33  ;;  %3453 = vmatprep.mubr.msk.f32.mxu0 %vm450_vm0, %v4104_v32 }
  0x45   : > { %3512 = vmatprep.mubr.msk.f32.mxu1 %vm450_vm0, %v4118_v34 }
  0x47   : > { %3454 = vmatmul.mubr.msk.f32.gmra.mxu0 %vm450_vm0, %v4115_v33 }
  0x48   : > { %3513 = vmatmul.mubr.msk.f32.gmra.mxu1 %vm450_vm0, %v4129_v35  ;;  %3456 = vmatprep.mubr.msk.f32.mxu0 %vm450_vm0, %v4118_v34 }
  0x49   : > { %3515 = vmatprep.mubr.msk.f32.mxu1 %vm450_vm0, %v4132_v36 }
  0x4b   : > { %3457 = vmatmul.mubr.msk.f32.gmra.mxu0 %vm450_vm0, %v4129_v35 }
  0x4c   : > { %3516 = vmatmul.mubr.msk.f32.gmra.mxu1 %vm450_vm0, %v4143_v37  ;;  %3459 = vmatprep.mubr.msk.f32.mxu0 %vm450_vm0, %v4132_v36 }
  0x4d   : > { %3518 = vmatprep.mubr.msk.f32.mxu1 %vm450_vm0, %v4146_v38 }
  0x4f   : > { %3460 = vmatmul.mubr.msk.f32.gmra.mxu0 %vm450_vm0, %v4143_v37 }
  0x50   : > { %3519 = vmatmul.mubr.msk.f32.gmra.mxu1 %vm450_vm0, %v4157_v39  ;;  %3462 = vmatprep.mubr.msk.f32.mxu0 %vm450_vm0, %v4146_v38 }
  0x53   : > { %3463 = vmatmul.mubr.msk.f32.gmra.mxu0 %vm450_vm0, %v4157_v39 }
  0x54   : > { %3529 = vmatprep.mubr.msk.f32.mxu0 %vm450_vm0, %v3941_v7 }
  0x57   : > { %3530 = vmatmul.mubr.msk.f32.vlgmr.msra.gmra.mxu0 %vm450_vm0, %v3944_v8 }
  0x58   : > { %3532 = vmatprep.mubr.msk.f32.mxu0 %vm450_vm0, %v3952_v10 }
  0x5b   : > { %3533 = vmatmul.mubr.msk.f32.gmra.mxu0 %vm450_vm0, %v3959_v11 }
  0x5c   : > { %3535 = vmatprep.mubr.msk.f32.mxu0 %vm450_vm0, %v3962_v12 }
  0x5f   : > { %3536 = vmatmul.mubr.msk.f32.gmra.mxu0 %vm450_vm0, %v3975_v13 }
  0x60   : > { %3538 = vmatprep.mubr.msk.f32.mxu0 %vm450_vm0, %v3978_v14 }
  0x63   : > { %3539 = vmatmul.mubr.msk.f32.gmra.mxu0 %vm450_vm0, %v3989_v15  ;;  %v4282_v15 = vld [vmem:[%s5238_s7] ss:$0 sm:$0xff] }
  0x64   : > { %3541 = vmatprep.mubr.msk.f32.mxu0 %vm450_vm0, %v3992_v16 }
  0x67   : > { %3542 = vmatmul.mubr.msk.f32.gmra.mxu0 %vm450_vm0, %v4003_v17 }
  0x68   : > { %3544 = vmatprep.mubr.msk.f32.mxu0 %vm450_vm0, %v4006_v18 }
  0x6b   : > { %3545 = vmatmul.mubr.msk.f32.gmra.mxu0 %vm450_vm0, %v4017_v19 }
  0x6c   : > { %3547 = vmatprep.mubr.msk.f32.mxu0 %vm450_vm0, %v4020_v20 }
  0x6f   : > { %3548 = vmatmul.mubr.msk.f32.gmra.mxu0 %vm450_vm0, %v4031_v21 }
  0x70   : > { %3550 = vmatprep.mubr.msk.f32.mxu0 %vm450_vm0, %v4034_v22 }
  0x73   : > { %3551 = vmatmul.mubr.msk.f32.gmra.mxu0 %vm450_vm0, %v4045_v23 }
  0x74   : > { %3553 = vmatprep.mubr.msk.f32.mxu0 %vm450_vm0, %v4048_v24 }
  0x77   : > { %3554 = vmatmul.mubr.msk.f32.gmra.mxu0 %vm450_vm0, %v4059_v25 }
  0x78   : > { %3556 = vmatprep.mubr.msk.f32.mxu0 %vm450_vm0, %v4062_v26 }
  0x7b   : > { %3557 = vmatmul.mubr.msk.f32.gmra.mxu0 %vm450_vm0, %v4073_v27 }
  0x7c   : > { %3559 = vmatprep.mubr.msk.f32.mxu0 %vm450_vm0, %v4076_v28 }
  0x7f   : > { %3560 = vmatmul.mubr.msk.f32.gmra.mxu0 %vm450_vm0, %v4087_v29 }
  0x80   : > { %3562 = vmatprep.mubr.msk.f32.mxu0 %vm450_vm0, %v4090_v30 }
  0x83   : > { %3563 = vmatmul.mubr.msk.f32.gmra.mxu0 %vm450_vm0, %v4101_v31 }
  0x84   : > { %3565 = vmatprep.mubr.msk.f32.mxu0 %vm450_vm0, %v4104_v32 }
  0x87   : > { %3566 = vmatmul.mubr.msk.f32.gmra.mxu0 %vm450_vm0, %v4115_v33 }
  0x88   : > { %3568 = vmatprep.mubr.msk.f32.mxu0 %vm450_vm0, %v4118_v34 }
  0x8b   : > { %3569 = vmatmul.mubr.msk.f32.gmra.mxu0 %vm450_vm0, %v4129_v35 }
  0x8c   : > { %3571 = vmatprep.mubr.msk.f32.mxu0 %vm450_vm0, %v4132_v36 }
  0x8f   : > { %3572 = vmatmul.mubr.msk.f32.gmra.mxu0 %vm450_vm0, %v4143_v37 }
  0x90   : > { %3574 = vmatprep.mubr.msk.f32.mxu0 %vm450_vm0, %v4146_v38 }
  0x93   : > { %3575 = vmatmul.mubr.msk.f32.gmra.mxu0 %vm450_vm0, %v4157_v39 }
  0xd4   : > { %v4169_v40 = vpop.f32.mrf.mxu1 }
  0xd6   : > { %v4174_v42 = vpop.f32.mrf.mxu1 }
  0xd7   : > { %v4176_v43 = vpop.f32.mrf.mxu0 }
  0xd8   : > { %v4186_v46 = vpop.f32.mrf.mxu1 }
  0xd9   : > { %v613_v48 = vpop.f32.mrf.mxu0 }
  0xda   : > { %v4191_v49 = vpop.f32.mrf.mxu1  ;;  %v614_v50 = vadd.f32 %v4181_v44, %v613_v48  ;;  %v897_v48 = vadd.f32 %v4186_v46, %v4282_v15  ;;  %v887_v46 = vadd.f32 %v4169_v40, %v4282_v15 }
  0xdb   : > { %v892_v53 = vadd.f32 %v4282_v15, %v4191_v49  ;;  %v882_v49 = vadd.f32 %v4282_v15, %v4174_v42 }
  0xdc   : > { %v4194_v51 = vpop.f32.mrf.mxu1  ;;  %v4196_v52 = vmul.f32 0.17677669, %v614_v50 }
  0xdd   : > { %v907_v39 = vadd.f32 %v4194_v51, %v4282_v15  ;;  %v3422_v51 = vpop.f32.mrf.mxu0 }
  0xde   : > { %v4201_v54 = vpop.f32.mrf.mxu1  ;;  %3309 = vmatprep.mubr.msk.f32.mxu1 %vm450_vm0, %v4196_v52 }
  0xdf   : > { %v902_v45 = vadd.f32 %v4282_v15, %v4201_v54 }
  0xe0   : > { %v4207_v55 = vpop.f32.mrf.mxu1 }
  0xe1   : > { %v917_v35 = vadd.f32 %v4207_v55, %v4282_v15  ;;  %v623_v55 = vpop.f32.mrf.mxu0 }
  0xe2   : > { %v4211_v56 = vpop.f32.mrf.mxu1 }
  0xe3   : > { %v912_v37 = vadd.f32 %v4282_v15, %v4211_v56 }
  0xe4   : > { %v4215_v57 = vpop.f32.mrf.mxu1 }
  0xe5   : > { %v927_v31 = vadd.f32 %v4215_v57, %v4282_v15  ;;  %v3425_v57 = vpop.f32.mrf.mxu0 }
  0xe6   : > { %v4219_v58 = vpop.f32.mrf.mxu1 }
  0xe7   : > { %v922_v33 = vadd.f32 %v4282_v15, %v4219_v58  ;;  %v619_v58 = vadd.f32 %v4176_v43, %v4181_v44 }
  0xe8   : > { %v4223_v59 = vpop.f32.mrf.mxu1 }
  0xe9   : > { %v937_v27 = vadd.f32 %v4223_v59, %v4282_v15  ;;  %v633_v59 = vpop.f32.mrf.mxu0 }
  0xea   : > { %v4227_v60 = vpop.f32.mrf.mxu1  ;;  %v634_v43 = vadd.f32 %v4181_v44, %v633_v59 }
  0xeb   : > { %v932_v29 = vadd.f32 %v4282_v15, %v4227_v60  ;;  %v624_v60 = vadd.f32 %v4181_v44, %v623_v55  ;;  %v3428_v40 = vpop.f32.mrf.mxu0 }
  0xec   : > { %v3493_v61 = vpop.f32.mrf.mxu1 }
  0xed   : > { %v947_v23 = vadd.f32 %v3493_v61, %v4282_v15  ;;  %v773_v61 = vmul.f32 0.17677669, %v619_v58 }
  0xee   : > { %v941_v62 = vpop.f32.mrf.mxu1 }
  0xef   : > { %v942_v25 = vadd.f32 %v4282_v15, %v941_v62  ;;  %v774_v62 = vmul.f32 0.17677669, %v624_v60 }
  0xf0   : > { %v3496_v63 = vpop.f32.mrf.mxu1 }
  0xf1   : > { %v957_v18 = vadd.f32 %v3496_v63, %v4282_v15  ;;  %v643_v63 = vpop.f32.mrf.mxu0 }
  0xf2   : > { %v951_v0 = vpop.f32.mrf.mxu1 }
  0xf3   : > { %v952_v21 = vadd.f32 %v4282_v15, %v951_v0  ;;  %v629_v0 = vadd.f32 %v3422_v51, %v4181_v44  ;;  %v3431_v42 = vpop.f32.mrf.mxu0 }
  0xf4   : > { %v4239_v1 = vpop.f32.mrf.mxu1 }
  0xf5   : > { %v967_v54 = vadd.f32 %v4239_v1, %v4282_v15  ;;  %v775_v1 = vmul.f32 0.17677669, %v629_v0 }
  0xf6   : > { %v4243_v2 = vpop.f32.mrf.mxu1 }
  0xf7   : > { %v962_v56 = vadd.f32 %v4282_v15, %v4243_v2  ;;  %v653_v2 = vpop.f32.mrf.mxu0 }
  0xf8   : > { %v4247_v3 = vpop.f32.mrf.mxu1 }
  0xf9   : > { %v977_v47 = vadd.f32 %v4247_v3, %v4282_v15  ;;  %v776_v3 = vmul.f32 0.17677669, %v634_v43 }
  0xfa   : > { %v4251_v4 = vpop.f32.mrf.mxu1 }
  0xfb   : > { %v972_v50 = vadd.f32 %v4282_v15, %v4251_v4  ;;  %v639_v4 = vadd.f32 %v3425_v57, %v4181_v44 }
  0xfc   : > { %v4255_v5 = vpop.f32.mrf.mxu1 }
  0xfd   : > { %v987_v38 = vadd.f32 %v4255_v5, %v4282_v15  ;;  %v644_v5 = vadd.f32 %v4181_v44, %v643_v63 }
  0xfe   : > { %v4259_v6 = vpop.f32.mrf.mxu1 }
  0xff   : > { %v982_v41 = vadd.f32 %v4282_v15, %v4259_v6 }
 0x100   : > { %v3508_v7 = vpop.f32.mrf.mxu1 }
 0x101   : > { %v997_v34 = vadd.f32 %v3508_v7, %v4282_v15  ;;  %v777_v7 = vmul.f32 0.17677669, %v639_v4 }
 0x102   : > { %v991_v8 = vpop.f32.mrf.mxu1 }
 0x103   : > { %v992_v36 = vadd.f32 %v4282_v15, %v991_v8 }
 0x104   : > { %v3511_v9 = vpop.f32.mrf.mxu1 }
 0x105   : > { %v1007_v30 = vadd.f32 %v3511_v9, %v4282_v15  ;;  %v778_v9 = vmul.f32 0.17677669, %v644_v5 }
 0x106   : > { %v1001_v10 = vpop.f32.mrf.mxu1 }
 0x107   : > { %v1002_v32 = vadd.f32 %v4282_v15, %v1001_v10  ;;  %v649_v10 = vadd.f32 %v3428_v40, %v4181_v44 }
 0x108   : > { %v3514_v11 = vpop.f32.mrf.mxu1 }
 0x109   : > { %v1017_v26 = vadd.f32 %v3514_v11, %v4282_v15 }
 0x10a   : > { %v1011_v12 = vpop.f32.mrf.mxu1 }
 0x10b   : > { %v1012_v28 = vadd.f32 %v4282_v15, %v1011_v12  ;;  %v654_v12 = vadd.f32 %v4181_v44, %v653_v2 }
 0x10c   : > { %v3517_v13 = vpop.f32.mrf.mxu1 }
 0x10d   : > { %v1027_v22 = vadd.f32 %v3517_v13, %v4282_v15 }
 0x10e   : > { %v1021_v14 = vpop.f32.mrf.mxu1 }
 0x10f   : > { %v1022_v24 = vadd.f32 %v4282_v15, %v1021_v14  ;;  %v779_v14 = vmul.f32 0.17677669, %v649_v10 }
 0x110   : > { %v3520_v16 = vpop.f32.mrf.mxu1 }
 0x111   : > { %v1037_v17 = vadd.f32 %v3520_v16, %v4282_v15 }
 0x112   : > { %v1031_v19 = vpop.f32.mrf.mxu1 }
 0x113   : > { %v1032_v20 = vadd.f32 %v4282_v15, %v1031_v19  ;;  %3277 = vmatprep.subr.msk.mxu1 %vm450_vm0, %v1037_v17  ;;  %v780_v15 = vmul.f32 0.17677669, %v654_v12  ;;  %v659_v17 = vadd.f32 %v3431_v42, %v4181_v44 }
 0x114   : > { %3278 = vmatpush3.xpose.msk.msra.mxu1 %vm450_vm0, %v957_v18 }
 0x115   : > { %3279 = vmatprep.subr.msk.mxu1 %vm450_vm0, %v1032_v20  ;;  %v781_v20 = vmul.f32 0.17677669, %v659_v17 }
 0x118   : > { %3280 = vmatpush3.xpose.msk.msra.mxu1 %vm450_vm0, %v952_v21 }
 0x119   : > { %3281 = vmatprep.subr.msk.mxu1 %vm450_vm0, %v1027_v22 }
 0x11c   : > { %3282 = vmatpush3.xpose.msk.msra.mxu1 %vm450_vm0, %v947_v23 }
 0x11d   : > { %3283 = vmatprep.subr.msk.mxu1 %vm450_vm0, %v1022_v24 }
 0x120   : > { %3284 = vmatpush3.xpose.msk.msra.mxu1 %vm450_vm0, %v942_v25 }
 0x121   : > { %3285 = vmatprep.subr.msk.mxu1 %vm450_vm0, %v1017_v26 }
 0x124   : > { %3286 = vmatpush3.xpose.msk.msra.mxu1 %vm450_vm0, %v937_v27 }
 0x125   : > { %3287 = vmatprep.subr.msk.mxu1 %vm450_vm0, %v1012_v28 }
 0x128   : > { %3288 = vmatpush3.xpose.msk.msra.mxu1 %vm450_vm0, %v932_v29 }
 0x129   : > { %3289 = vmatprep.subr.msk.mxu1 %vm450_vm0, %v1007_v30 }
 0x12c   : > { %3290 = vmatpush3.xpose.msk.msra.mxu1 %vm450_vm0, %v927_v31 }
 0x12d   : > { %3291 = vmatprep.subr.msk.mxu1 %vm450_vm0, %v1002_v32 }
 0x130   : > { %3292 = vmatpush3.xpose.msk.msra.mxu1 %vm450_vm0, %v922_v33 }
 0x131   : > { %3293 = vmatprep.subr.msk.mxu1 %vm450_vm0, %v997_v34 }
 0x134   : > { %3294 = vmatpush3.xpose.msk.msra.mxu1 %vm450_vm0, %v917_v35 }
 0x135   : > { %3295 = vmatprep.subr.msk.mxu1 %vm450_vm0, %v992_v36 }
 0x138   : > { %3296 = vmatpush3.xpose.msk.msra.mxu1 %vm450_vm0, %v912_v37 }
 0x139   : > { %3297 = vmatprep.subr.msk.mxu1 %vm450_vm0, %v987_v38 }
 0x13c   : > { %3298 = vmatpush3.xpose.msk.msra.mxu1 %vm450_vm0, %v907_v39 }
 0x13d   : > { %3299 = vmatprep.subr.msk.mxu1 %vm450_vm0, %v982_v41 }
 0x140   : > { %3300 = vmatpush3.xpose.msk.msra.mxu1 %vm450_vm0, %v902_v45 }
 0x141   : > { %3301 = vmatprep.subr.msk.mxu1 %vm450_vm0, %v977_v47 }
 0x144   : > { %3302 = vmatpush3.xpose.msk.msra.mxu1 %vm450_vm0, %v897_v48 }
 0x145   : > { %3303 = vmatprep.subr.msk.mxu1 %vm450_vm0, %v972_v50 }
 0x148   : > { %3304 = vmatpush3.xpose.msk.msra.mxu1 %vm450_vm0, %v892_v53 }
 0x149   : > { %3305 = vmatprep.subr.msk.mxu1 %vm450_vm0, %v967_v54 }
 0x14c   : > { %3306 = vmatpush3.xpose.msk.msra.mxu1 %vm450_vm0, %v887_v46 }
 0x14d   : > { %3307 = vmatprep.subr.msk.mxu1 %vm450_vm0, %v962_v56 }
 0x150   : > { %3308 = vmatpush3.xpose.msk.msra.mxu1 %vm450_vm0, %v882_v49 }
 0x153   : > { %3310 = vmatmul.mubr.msk.f32.vlgmr.msra.gmra.mxu1 %vm450_vm0, %v4196_v52  ;;  %v3434_v52 = vpop.f32.mrf.mxu0 }
 0x154   : > { %3311 = vmatprep.mubr.msk.f32.mxu1 %vm450_vm0, %v773_v61  ;;  %v669_v24 = vadd.f32 %v3434_v52, %v4181_v44 }
 0x155   : > { %v663_v6 = vpop.f32.mrf.mxu0 }
 0x156   : > { %v664_v19 = vadd.f32 %v4181_v44, %v663_v6  ;;  %v783_v27 = vmul.f32 0.17677669, %v669_v24 }
 0x157   : > { %3312 = vmatmul.mubr.msk.f32.gmra.mxu1 %vm450_vm0, %v773_v61  ;;  %v3437_v8 = vpop.f32.mrf.mxu0 }
 0x158   : > { %3313 = vmatprep.mubr.msk.f32.mxu1 %vm450_vm0, %v774_v62  ;;  %v782_v22 = vmul.f32 0.17677669, %v664_v19  ;;  %v679_v30 = vadd.f32 %v3437_v8, %v4181_v44 }
 0x159   : > { %v673_v11 = vpop.f32.mrf.mxu0 }
 0x15a   : > { %v674_v25 = vadd.f32 %v4181_v44, %v673_v11  ;;  %v785_v34 = vmul.f32 0.17677669, %v679_v30 }
 0x15b   : > { %3314 = vmatmul.mubr.msk.f32.gmra.mxu1 %vm450_vm0, %v774_v62  ;;  %v3440_v13 = vpop.f32.mrf.mxu0 }
 0x15c   : > { %3315 = vmatprep.mubr.msk.f32.mxu1 %vm450_vm0, %v775_v1  ;;  %v784_v29 = vmul.f32 0.17677669, %v674_v25  ;;  %v689_v37 = vadd.f32 %v3440_v13, %v4181_v44 }
 0x15d   : > { %v683_v16 = vpop.f32.mrf.mxu0 }
 0x15e   : > { %v684_v32 = vadd.f32 %v4181_v44, %v683_v16  ;;  %v787_v41 = vmul.f32 0.17677669, %v689_v37 }
 0x15f   : > { %3316 = vmatmul.mubr.msk.f32.gmra.mxu1 %vm450_vm0, %v775_v1  ;;  %v3443_v18 = vpop.f32.mrf.mxu0 }
 0x160   : > { %3317 = vmatprep.mubr.msk.f32.mxu1 %vm450_vm0, %v776_v3  ;;  %v786_v35 = vmul.f32 0.17677669, %v684_v32  ;;  %v699_v50 = vadd.f32 %v3443_v18, %v4181_v44 }
 0x161   : > { %v693_v21 = vpop.f32.mrf.mxu0 }
 0x162   : > { %v694_v39 = vadd.f32 %v4181_v44, %v693_v21  ;;  %v789_v54 = vmul.f32 0.17677669, %v699_v50  ;;  %v4483_v21 = vld [vmem:[%s5239_s8] ss:$0 sm:$0xff] }
 0x163   : > { %3318 = vmatmul.mubr.msk.f32.gmra.mxu1 %vm450_vm0, %v776_v3  ;;  %v3446_v23 = vpop.f32.mrf.mxu0 }
 0x164   : > { %3319 = vmatprep.mubr.msk.f32.mxu1 %vm450_vm0, %v777_v7  ;;  %v788_v47 = vmul.f32 0.17677669, %v694_v39  ;;  %v709_v56 = vadd.f32 %v3446_v23, %v4181_v44 }
 0x165   : > { %v703_v26 = vpop.f32.mrf.mxu0 }
 0x166   : > { %v704_v51 = vadd.f32 %v4181_v44, %v703_v26  ;;  %v791_v59 = vmul.f32 0.17677669, %v709_v56 }
 0x167   : > { %3320 = vmatmul.mubr.msk.f32.gmra.mxu1 %vm450_vm0, %v777_v7  ;;  %v3449_v28 = vpop.f32.mrf.mxu0 }
 0x168   : > { %3321 = vmatprep.mubr.msk.f32.mxu1 %vm450_vm0, %v778_v9  ;;  %v790_v46 = vmul.f32 0.17677669, %v704_v51  ;;  %v719_v61 = vadd.f32 %v3449_v28, %v4181_v44  ;;  %v3842_v28 = vmov 0.0  }
 0x169   : > { %v713_v31 = vpop.f32.mrf.mxu0  ;;  %2173 = vmatprep.subr.mxu0 %v3842_v28 }
 0x16a   : > { %v714_v49 = vadd.f32 %v4181_v44, %v713_v31  ;;  %v793_v42 = vmul.f32 0.17677669, %v719_v61 }
 0x16b   : > { %3322 = vmatmul.mubr.msk.f32.gmra.mxu1 %vm450_vm0, %v778_v9  ;;  %v3452_v33 = vpop.f32.mrf.mxu0 }
 0x16c   : > { %3323 = vmatprep.mubr.msk.f32.mxu1 %vm450_vm0, %v779_v14  ;;  %v792_v60 = vmul.f32 0.17677669, %v714_v49  ;;  %v729_v3 = vadd.f32 %v3452_v33, %v4181_v44 }
 0x16d   : > { %v723_v36 = vpop.f32.mrf.mxu0 }
 0x16e   : > { %v724_v63 = vadd.f32 %v4181_v44, %v723_v36  ;;  %v795_v6 = vmul.f32 0.17677669, %v729_v3 }
 0x16f   : > { %3324 = vmatmul.mubr.msk.f32.gmra.mxu1 %vm450_vm0, %v779_v14  ;;  %v3455_v38 = vpop.f32.mrf.mxu0 }
 0x170   : > { %3325 = vmatprep.mubr.msk.f32.mxu1 %vm450_vm0, %v780_v15  ;;  %v794_v1 = vmul.f32 0.17677669, %v724_v63  ;;  %v739_v10 = vadd.f32 %v3455_v38, %v4181_v44 }
 0x171   : > { %v733_v45 = vpop.f32.mrf.mxu0 }
 0x172   : > { %v734_v4 = vadd.f32 %v4181_v44, %v733_v45  ;;  %v797_v14 = vmul.f32 0.17677669, %v739_v10 }
 0x173   : > { %3326 = vmatmul.mubr.msk.f32.gmra.mxu1 %vm450_vm0, %v780_v15  ;;  %v3458_v48 = vpop.f32.mrf.mxu0 }
 0x174   : > { %3327 = vmatprep.mubr.msk.f32.mxu1 %vm450_vm0, %v781_v20  ;;  %v796_v8 = vmul.f32 0.17677669, %v734_v4  ;;  %v749_v18 = vadd.f32 %v3458_v48, %v4181_v44 }
 0x175   : > { %v743_v53 = vpop.f32.mrf.mxu0 }
 0x176   : > { %v744_v12 = vadd.f32 %v4181_v44, %v743_v53  ;;  %v799_v23 = vmul.f32 0.17677669, %v749_v18  ;;  %v1276_v18 = vld [vmem:[%s5233_s2] sm:$0xff] }
 0x177   : > { %3328 = vmatmul.mubr.msk.f32.gmra.mxu1 %vm450_vm0, %v781_v20  ;;  %v4431_v55 = vpop.f32.mrf.mxu0 }
 0x178   : > { %3329 = vmatprep.mubr.msk.f32.mxu1 %vm450_vm0, %v782_v22  ;;  %v798_v16 = vmul.f32 0.17677669, %v744_v12 }
 0x179   : > { %v753_v57 = vpop.f32.mrf.mxu0 }
 0x17a   : > { %v754_v20 = vadd.f32 %v4181_v44, %v753_v57 }
 0x17b   : > { %3330 = vmatmul.mubr.msk.f32.gmra.mxu1 %vm450_vm0, %v782_v22  ;;  %v4438_v58 = vpop.f32.mrf.mxu0 }
 0x17c   : > { %3331 = vmatprep.mubr.msk.f32.mxu1 %vm450_vm0, %v783_v27  ;;  %v800_v25 = vmul.f32 0.17677669, %v754_v20  ;;  %v1277_v20 = vld [vmem:[%s5233_s2 + $0x8] sm:$0xff] }
 0x17d   : > { %v763_v40 = vpop.f32.mrf.mxu0 }
 0x17e   : > { %v764_v33 = vadd.f32 %v4181_v44, %v763_v40 }
 0x17f   : > { %3332 = vmatmul.mubr.msk.f32.gmra.mxu1 %vm450_vm0, %v783_v27  ;;  %v4444_v62 = vpop.f32.mrf.mxu0 }
 0x180   : > { %3333 = vmatprep.mubr.msk.f32.mxu1 %vm450_vm0, %v784_v29  ;;  %v802_v39 = vmul.f32 0.17677669, %v764_v33  ;;  %v1281_v33 = vld [vmem:[%s5233_s2 + $0x28] sm:$0xff] }
 0x181   : > { %v4448_v0 = vpop.f32.mrf.mxu0 }
 0x183   : > { %3334 = vmatmul.mubr.msk.f32.gmra.mxu1 %vm450_vm0, %v784_v29  ;;  %v4451_v43 = vpop.f32.mrf.mxu0  ;;  %v759_v29 = vadd.f32 %v4431_v55, %v4181_v44 }
 0x184   : > { %3335 = vmatprep.mubr.msk.f32.mxu1 %vm450_vm0, %v785_v34 }
 0x185   : > { %v4454_v2 = vpop.f32.mrf.mxu0  ;;  %v801_v36 = vmul.f32 0.17677669, %v759_v29 }
 0x186   : > { %v1128_v61 = vadd.f32 %v4483_v21, %v4454_v2 }
 0x187   : > { %3336 = vmatmul.mubr.msk.f32.gmra.mxu1 %vm450_vm0, %v785_v34  ;;  %v4458_v52 = vpop.f32.mrf.mxu0 }
 0x188   : > { %3337 = vmatprep.mubr.msk.f32.mxu1 %vm450_vm0, %v786_v35  ;;  %v1143_v57 = vadd.f32 %v4458_v52, %v4483_v21 }
 0x189   : > { %v4462_v5 = vpop.f32.mrf.mxu0 }
 0x18b   : > { %3338 = vmatmul.mubr.msk.f32.gmra.mxu1 %vm450_vm0, %v786_v35  ;;  %v4465_v7 = vpop.f32.mrf.mxu0 }
 0x18c   : > { %3339 = vmatprep.mubr.msk.f32.mxu1 %vm450_vm0, %v787_v41 }
 0x18d   : > { %v4468_v9 = vpop.f32.mrf.mxu0 }
 0x18f   : > { %3340 = vmatmul.mubr.msk.f32.gmra.mxu1 %vm450_vm0, %v787_v41  ;;  %v3543_v11 = vpop.f32.mrf.mxu0 }
 0x190   : > { %3341 = vmatprep.mubr.msk.f32.mxu1 %vm450_vm0, %v788_v47  ;;  %v1163_v48 = vadd.f32 %v3543_v11, %v4483_v21 }
 0x191   : > { %v1157_v13 = vpop.f32.mrf.mxu0 }
 0x192   : > { %v1158_v51 = vadd.f32 %v4483_v21, %v1157_v13 }
 0x193   : > { %3342 = vmatmul.mubr.msk.f32.gmra.mxu1 %vm450_vm0, %v788_v47  ;;  %v3546_v15 = vpop.f32.mrf.mxu0  ;;  %v769_v47 = vadd.f32 %v4438_v58, %v4181_v44  ;;  %v1153_v44 = vadd.f32 %v4465_v7, %v4483_v21  ;;  %v1138_v58 = vadd.f32 %v4483_v21, %v4462_v5 }
 0x194   : > { %3343 = vmatprep.mubr.msk.f32.mxu1 %vm450_vm0, %v789_v54  ;;  %v1173_v37 = vadd.f32 %v3546_v15, %v4483_v21 }
 0x195   : > { %v1167_v17 = vpop.f32.mrf.mxu0 }
 0x196   : > { %v1168_v41 = vadd.f32 %v4483_v21, %v1167_v17 }
 0x197   : > { %3344 = vmatmul.mubr.msk.f32.gmra.mxu1 %vm450_vm0, %v789_v54  ;;  %v3549_v19 = vpop.f32.mrf.mxu0  ;;  %v803_v54 = vmul.f32 0.17677669, %v769_v47 }
 0x198   : > { %3345 = vmatprep.mubr.msk.f32.mxu1 %vm450_vm0, %v790_v46  ;;  %v1183_v30 = vadd.f32 %v3549_v19, %v4483_v21 }
 0x199   : > { %v1177_v22 = vpop.f32.mrf.mxu0 }
 0x19a   : > { %v1178_v34 = vadd.f32 %v4483_v21, %v1177_v22 }
 0x19b   : > { %3346 = vmatmul.mubr.msk.f32.gmra.mxu1 %vm450_vm0, %v790_v46  ;;  %v3552_v24 = vpop.f32.mrf.mxu0  ;;  %v1148_v46 = vadd.f32 %v4483_v21, %v4468_v9 }
 0x19c   : > { %3347 = vmatprep.mubr.msk.f32.mxu1 %vm450_vm0, %v791_v59  ;;  %v1193_v26 = vadd.f32 %v3552_v24, %v4483_v21  ;;  %v1278_v24 = vld [vmem:[%s5233_s2 + $0x10] sm:$0xff] }
 0x19d   : > { %v1187_v27 = vpop.f32.mrf.mxu0 }
 0x19e   : > { %v1188_v31 = vadd.f32 %v4483_v21, %v1187_v27  ;;  %2174 = vmatpush1.msra.mxu0 %v1193_v26  ;;  %v1279_v26 = vld [vmem:[%s5233_s2 + $0x18] sm:$0xff] }
 0x19f   : > { %3348 = vmatmul.mubr.msk.f32.gmra.mxu1 %vm450_vm0, %v791_v59  ;;  %v4494_v32 = vpop.f32.mrf.mxu0  ;;  %2175 = vmatprep.subr.mxu0 %v3842_v28 }
 0x1a0   : > { %3349 = vmatprep.mubr.msk.f32.mxu1 %vm450_vm0, %v792_v60  ;;  %2176 = vmatpush1.msra.mxu0 %v1188_v31  ;;  %v1280_v31 = vld [vmem:[%s5233_s2 + $0x20] sm:$0xff] }
 0x1a1   : > { %v4500_v35 = vpop.f32.mrf.mxu0  ;;  %2177 = vmatprep.subr.mxu0 %v3842_v28 }
 0x1a2   : > { %2178 = vmatpush1.msra.mxu0 %v1183_v30  ;;  %v1198_v17 = vadd.f32 %v4483_v21, %v4500_v35 }
 0x1a3   : > { %3350 = vmatmul.mubr.msk.f32.gmra.mxu1 %vm450_vm0, %v792_v60  ;;  %v4505_v38 = vpop.f32.mrf.mxu0  ;;  %2179 = vmatprep.subr.mxu0 %v3842_v28  ;;  %v1133_v60 = vadd.f32 %v4451_v43, %v4483_v21  ;;  %v1118_v43 = vadd.f32 %v4483_v21, %v4448_v0 }
 0x1a4   : > { %3351 = vmatprep.mubr.msk.f32.mxu1 %vm450_vm0, %v793_v42  ;;  %2180 = vmatpush1.msra.mxu0 %v1178_v34 }
 0x1a5   : > { %v4510_v45 = vpop.f32.mrf.mxu0  ;;  %2181 = vmatprep.subr.mxu0 %v3842_v28 }
 0x1a6   : > { %2182 = vmatpush1.msra.mxu0 %v1173_v37  ;;  %v1208_v15 = vadd.f32 %v4483_v21, %v4510_v45 }
 0x1a7   : > { %3352 = vmatmul.mubr.msk.f32.gmra.mxu1 %vm450_vm0, %v793_v42  ;;  %v4517_v50 = vpop.f32.mrf.mxu0  ;;  %2183 = vmatprep.subr.mxu0 %v3842_v28  ;;  %v1123_v42 = vadd.f32 %v4444_v62, %v4483_v21 }
 0x1a8   : > { %3353 = vmatprep.mubr.msk.f32.mxu1 %vm450_vm0, %v794_v1  ;;  %2184 = vmatpush1.msra.mxu0 %v1168_v41  ;;  %v1223_v12 = vadd.f32 %v4517_v50, %v4483_v21  ;;  %v1283_v41 = vld [vmem:[%s5233_s2 + $0x38] sm:$0xff] }
 0x1a9   : > { %v4522_v53 = vpop.f32.mrf.mxu0  ;;  %2185 = vmatprep.subr.mxu0 %v3842_v28 }
 0x1aa   : > { %2186 = vmatpush1.msra.mxu0 %v1163_v48  ;;  %v1218_v13 = vadd.f32 %v4483_v21, %v4522_v53 }
 0x1ab   : > { %3354 = vmatmul.mubr.msk.f32.gmra.mxu1 %vm450_vm0, %v794_v1  ;;  %v3564_v55 = vpop.f32.mrf.mxu0  ;;  %2187 = vmatprep.subr.mxu0 %v3842_v28 }
 0x1ac   : > { %3355 = vmatprep.mubr.msk.f32.mxu1 %vm450_vm0, %v795_v6  ;;  %2188 = vmatpush1.msra.mxu0 %v1158_v51  ;;  %v1233_v10 = vadd.f32 %v3564_v55, %v4483_v21  ;;  %v1284_v51 = vld [vmem:[%s5233_s2 + $0x40] sm:$0xff] }
 0x1ad   : > { %v1227_v56 = vpop.f32.mrf.mxu0  ;;  %2189 = vmatprep.subr.mxu0 %v3842_v28 }
 0x1ae   : > { %2190 = vmatpush1.msra.mxu0 %v1153_v44  ;;  %v1228_v11 = vadd.f32 %v4483_v21, %v1227_v56 }
 0x1af   : > { %3356 = vmatmul.mubr.msk.f32.gmra.mxu1 %vm450_vm0, %v795_v6  ;;  %v3567_v49 = vpop.f32.mrf.mxu0  ;;  %2191 = vmatprep.subr.mxu0 %v3842_v28 }
 0x1b0   : > { %3357 = vmatprep.mubr.msk.f32.mxu1 %vm450_vm0, %v796_v8  ;;  %2192 = vmatpush1.msra.mxu0 %v1148_v46 }
 0x1b1   : > { %v1237_v59 = vpop.f32.mrf.mxu0  ;;  %2193 = vmatprep.subr.mxu0 %v3842_v28 }
 0x1b2   : > { %2194 = vmatpush1.msra.mxu0 %v1143_v57  ;;  %v1238_v9 = vadd.f32 %v4483_v21, %v1237_v59  ;;  %v1286_v57 = vld [vmem:[%s5233_s2 + $0x50] sm:$0xff] }
 0x1b3   : > { %3358 = vmatmul.mubr.msk.f32.gmra.mxu1 %vm450_vm0, %v796_v8  ;;  %v3570_v40 = vpop.f32.mrf.mxu0  ;;  %2195 = vmatprep.subr.mxu0 %v3842_v28  ;;  %v1243_v8 = vadd.f32 %v3567_v49, %v4483_v21 }
 0x1b4   : > { %3359 = vmatprep.mubr.msk.f32.mxu1 %vm450_vm0, %v797_v14  ;;  %2196 = vmatpush1.msra.mxu0 %v1138_v58  ;;  %v1253_v6 = vadd.f32 %v3570_v40, %v4483_v21  ;;  %v1287_v58 = vld [vmem:[%s5233_s2 + $0x58] sm:$0xff] }
 0x1b5   : > { %v1247_v63 = vpop.f32.mrf.mxu0  ;;  %2197 = vmatprep.subr.mxu0 %v3842_v28 }
 0x1b6   : > { %2198 = vmatpush1.msra.mxu0 %v1133_v60  ;;  %v1248_v7 = vadd.f32 %v4483_v21, %v1247_v63  ;;  %v1288_v63 = vld [vmem:[%s5233_s2 + $0x60] sm:$0xff] }
 0x1b7   : > { %3360 = vmatmul.mubr.msk.f32.gmra.mxu1 %vm450_vm0, %v797_v14  ;;  %v3573_v1 = vpop.f32.mrf.mxu0  ;;  %2199 = vmatprep.subr.mxu0 %v3842_v28  ;;  %v1213_v14 = vadd.f32 %v4505_v38, %v4483_v21  ;;  %v1282_v38 = vld [vmem:[%s5233_s2 + $0x30] sm:$0xff] }
 0x1b8   : > { %3361 = vmatprep.mubr.msk.f32.mxu1 %vm450_vm0, %v798_v16  ;;  %2200 = vmatpush1.msra.mxu0 %v1128_v61  ;;  %v1263_v62 = vadd.f32 %v3573_v1, %v4483_v21  ;;  %v1289_v1 = vld [vmem:[%s5233_s2 + $0x68] sm:$0xff] }
 0x1b9   : > { %v1257_v3 = vpop.f32.mrf.mxu0  ;;  %2201 = vmatprep.subr.mxu0 %v3842_v28 }
 0x1ba   : > { %2202 = vmatpush1.msra.mxu0 %v1123_v42  ;;  %v1258_v0 = vadd.f32 %v4483_v21, %v1257_v3 }
 0x1bb   : > { %3362 = vmatmul.mubr.msk.f32.gmra.mxu1 %vm450_vm0, %v798_v16  ;;  %v3576_v2 = vpop.f32.mrf.mxu0  ;;  %2203 = vmatprep.subr.mxu0 %v3842_v28  ;;  %v1203_v16 = vadd.f32 %v4494_v32, %v4483_v21 }
 0x1bc   : > { %3363 = vmatprep.mubr.msk.f32.mxu1 %vm450_vm0, %v799_v23  ;;  %v1273_v52 = vadd.f32 %v3576_v2, %v4483_v21  ;;  %2204 = vmatpush1.msra.mxu0 %v1118_v43 }
 0x1bd   : > { %v1267_v4 = vpop.f32.mrf.mxu0  ;;  %2205 = vmatprep.subr.mxu0 %v3842_v28 }
 0x1be   : > { %v1268_v5 = vadd.f32 %v4483_v21, %v1267_v4  ;;  %2206 = vmatpush2.msra.mxu0 %v1273_v52  ;;  %v1290_v4 = vld [vmem:[%s5233_s2 + $0x70] sm:$0xff] }
 0x1bf   : > { %3364 = vmatmul.mubr.msk.f32.gmra.mxu1 %vm450_vm0, %v799_v23  ;;  %2207 = vmatprep.subr.mxu0 %v3842_v28 }
 0x1c0   : > { %3365 = vmatprep.mubr.msk.f32.mxu1 %vm450_vm0, %v800_v25  ;;  %2208 = vmatpush2.msra.mxu0 %v1268_v5  ;;  %v1291_v5 = vld [vmem:[%s5233_s2 + $0x78] sm:$0xff] }
 0x1c1   : > { %2209 = vmatprep.subr.mxu0 %v3842_v28 }
 0x1c2   : > { %2210 = vmatpush2.msra.mxu0 %v1263_v62 }
 0x1c3   : > { %3366 = vmatmul.mubr.msk.f32.gmra.mxu1 %vm450_vm0, %v800_v25  ;;  %2211 = vmatprep.subr.mxu0 %v3842_v28 }
 0x1c4   : > { %3367 = vmatprep.mubr.msk.f32.mxu1 %vm450_vm0, %v801_v36  ;;  %2212 = vmatpush2.msra.mxu0 %v1258_v0 }
 0x1c5   : > { %2213 = vmatprep.subr.mxu0 %v3842_v28 }
 0x1c6   : > { %2214 = vmatpush2.msra.mxu0 %v1253_v6 }
 0x1c7   : > { %3368 = vmatmul.mubr.msk.f32.gmra.mxu1 %vm450_vm0, %v801_v36  ;;  %2215 = vmatprep.subr.mxu0 %v3842_v28 }
 0x1c8   : > { %3369 = vmatprep.mubr.msk.f32.mxu1 %vm450_vm0, %v802_v39  ;;  %2216 = vmatpush2.msra.mxu0 %v1248_v7 }
 0x1c9   : > { %2217 = vmatprep.subr.mxu0 %v3842_v28 }
 0x1ca   : > { %2218 = vmatpush2.msra.mxu0 %v1243_v8 }
 0x1cb   : > { %3370 = vmatmul.mubr.msk.f32.gmra.mxu1 %vm450_vm0, %v802_v39  ;;  %2219 = vmatprep.subr.mxu0 %v3842_v28 }
 0x1cc   : > { %3371 = vmatprep.mubr.msk.f32.mxu1 %vm450_vm0, %v803_v54  ;;  %2220 = vmatpush2.msra.mxu0 %v1238_v9  ;;  %v1292_v9 = vld [vmem:[%s5233_s2 + $0x80] sm:$0xff] }
 0x1cd   : > { %2221 = vmatprep.subr.mxu0 %v3842_v28 }
 0x1ce   : > { %2222 = vmatpush2.msra.mxu0 %v1233_v10 }
 0x1cf   : > { %3372 = vmatmul.mubr.msk.f32.gmra.mxu1 %vm450_vm0, %v803_v54  ;;  %2223 = vmatprep.subr.mxu0 %v3842_v28  ;;  %v1285_v54 = vld [vmem:[%s5233_s2 + $0x48] sm:$0xff] }
 0x1d0   : > { %2224 = vmatpush2.msra.mxu0 %v1228_v11  ;;  %v1293_v11 = vld [vmem:[%s5233_s2 + $0x88] sm:$0xff] }
 0x1d1   : > { %2225 = vmatprep.subr.mxu0 %v3842_v28 }
 0x1d2   : > { %2226 = vmatpush2.msra.mxu0 %v1223_v12 }
 0x1d3   : > { %2227 = vmatprep.subr.mxu0 %v3842_v28 }
 0x1d4   : > { %2228 = vmatpush2.msra.mxu0 %v1218_v13 }
 0x1d5   : > { %2229 = vmatprep.subr.mxu0 %v3842_v28 }
 0x1d6   : > { %2230 = vmatpush2.msra.mxu0 %v1213_v14 }
 0x1d7   : > { %2231 = vmatprep.subr.mxu0 %v3842_v28 }
 0x1d8   : > { %2232 = vmatpush2.msra.mxu0 %v1208_v15 }
 0x1d9   : > { %2233 = vmatprep.subr.mxu0 %v3842_v28 }
 0x1da   : > { %2234 = vmatpush2.msra.mxu0 %v1203_v16  ;;  %v1294_v16 = vld [vmem:[%s5233_s2 + $0x90] sm:$0xff] }
 0x1db   : > { %2235 = vmatprep.subr.mxu0 %v3842_v28 }
 0x1dc   : > { %2236 = vmatpush2.msra.mxu0 %v1198_v17 }
 0x213   : > { %v1598_v19 = vpop.f32.mrf.mxu1 }
 0x214   : > { %v4597_v23 = vadd.f32 %v1598_v19, %v1276_v18  ;;  %v1295_v18 = vld [vmem:[%s5233_s2 + $0x98] sm:$0xff] }
 0x215   : > { %v1600_v22 = vpop.f32.mrf.mxu1 }
 0x216   : > { %v4599_v21 = vadd.f32 %v1600_v22, %v1277_v20 }
 0x217   : > { %v1604_v25 = vpop.f32.mrf.mxu1 }
 0x218   : > { %v1789_v27 = vmax.f32 %v4597_v23, %v4599_v21  ;;  %v4609_v29 = vadd.f32 %v1604_v25, %v1278_v24  ;;  %v1296_v25 = vld [vmem:[%s5233_s2 + $0xa0] sm:$0xff] }
 0x219   : > { %v1606_v28 = vpop.f32.mrf.mxu1 }
 0x21a   : > { %v4611_v30 = vadd.f32 %v1606_v28, %v1279_v26  ;;  %1790 = vmax.xlane.f32.xlu0 %v1789_v27  ;;  %v1297_v27 = vld [vmem:[%s5233_s2 + $0xa8] sm:$0xff] }
 0x21b   : > { %v1610_v32 = vpop.f32.mrf.mxu1 }
 0x21c   : > { %v1792_v34 = vmax.f32 %v4609_v29, %v4611_v30  ;;  %v4621_v36 = vadd.f32 %v1610_v32, %v1280_v31 }
 0x21d   : > { %v1612_v35 = vpop.f32.mrf.mxu1 }
 0x21e   : > { %v4623_v37 = vadd.f32 %v1612_v35, %v1281_v33  ;;  %1793 = vmax.xlane.f32.xlu0 %v1792_v34  ;;  %v1298_v34 = vld [vmem:[%s5233_s2 + $0xb0] sm:$0xff] }
 0x21f   : > { %v1616_v39 = vpop.f32.mrf.mxu1 }
 0x220   : > { %v1795_v45 = vmax.f32 %v4621_v36, %v4623_v37  ;;  %v4633_v48 = vadd.f32 %v1616_v39, %v1282_v38  ;;  %v1299_v38 = vld [vmem:[%s5233_s2 + $0xb8] sm:$0xff] }
 0x221   : > { %v1618_v47 = vpop.f32.mrf.mxu1 }
 0x222   : > { %v4635_v50 = vadd.f32 %v1618_v47, %v1283_v41  ;;  %1796 = vmax.xlane.f32.xlu1 %v1795_v45 }
 0x223   : > { %v1622_v53 = vpop.f32.mrf.mxu1 }
 0x224   : > { %v1798_v44 = vmax.f32 %v4633_v48, %v4635_v50  ;;  %v4645_v46 = vadd.f32 %v1622_v53, %v1284_v51  ;;  %v1300_v51 = vld [vmem:[%s5233_s2 + $0xc0] sm:$0xff] }
 0x225   : > { %v1624_v55 = vpop.f32.mrf.mxu1 }
 0x226   : > { %v4647_v56 = vadd.f32 %v1624_v55, %v1285_v54  ;;  %1799 = vmax.xlane.f32.xlu1 %v1798_v44  ;;  %v1301_v54 = vld [vmem:[%s5233_s2 + $0xc8] sm:$0xff] }
 0x227   : > { %v1628_v49 = vpop.f32.mrf.mxu1 }
 0x228   : > { %v1801_v59 = vmax.f32 %v4645_v46, %v4647_v56  ;;  %v4657_v40 = vadd.f32 %v1628_v49, %v1286_v57 }
 0x229   : > { %v1630_v60 = vpop.f32.mrf.mxu1 }
 0x22a   : > { %v4659_v61 = vadd.f32 %v1630_v60, %v1287_v58  ;;  %1802 = vmax.xlane.f32.xlu0 %v1801_v59  ;;  %v1302_v58 = vld [vmem:[%s5233_s2 + $0xd0] sm:$0xff]  ;;  %v1303_v60 = vld [vmem:[%s5233_s2 + $0xd8] sm:$0xff] }
 0x22b   : > { %v1634_v42 = vpop.f32.mrf.mxu1 }
 0x22c   : > { %v1804_v43 = vmax.f32 %v4657_v40, %v4659_v61  ;;  %v4669_v2 = vadd.f32 %v1634_v42, %v1288_v63 }
 0x22d   : > { %v1636_v3 = vpop.f32.mrf.mxu1 }
 0x22e   : > { %v4671_v52 = vadd.f32 %v1636_v3, %v1289_v1  ;;  %1805 = vmax.xlane.f32.xlu1 %v1804_v43  ;;  %v1304_v3 = vld [vmem:[%s5233_s2 + $0xe0] sm:$0xff] }
 0x22f   : > { %v1640_v62 = vpop.f32.mrf.mxu1 }
 0x230   : > { %v1807_v0 = vmax.f32 %v4669_v2, %v4671_v52  ;;  %v4681_v7 = vadd.f32 %v1640_v62, %v1290_v4  ;;  %v1305_v62 = vld [vmem:[%s5233_s2 + $0xe8] sm:$0xff] }
 0x231   : > { %v1642_v6 = vpop.f32.mrf.mxu1 }
 0x232   : > { %v4683_v8 = vadd.f32 %v1642_v6, %v1291_v5  ;;  %1808 = vmax.xlane.f32.xlu0 %v1807_v0 }
 0x233   : > { %v1646_v10 = vpop.f32.mrf.mxu1 }
 0x234   : > { %v1810_v12 = vmax.f32 %v4681_v7, %v4683_v8  ;;  %v4693_v14 = vadd.f32 %v1646_v10, %v1292_v9  ;;  %v1306_v10 = vld [vmem:[%s5233_s2 + $0xf0] sm:$0xff] }
 0x235   : > { %v1648_v13 = vpop.f32.mrf.mxu1 }
 0x236   : > { %v4695_v15 = vadd.f32 %v1648_v13, %v1293_v11  ;;  %1811 = vmax.xlane.f32.xlu1 %v1810_v12  ;;  %v1307_v12 = vld [vmem:[%s5233_s2 + $0xf8] sm:$0xff] }
 0x237   : > { %v1652_v17 = vpop.f32.mrf.mxu1 }
 0x238   : > { %v1813_v19 = vmax.f32 %v4693_v14, %v4695_v15  ;;  %v4705_v22 = vadd.f32 %v1652_v17, %v1294_v16 }
 0x239   : > { %v1654_v20 = vpop.f32.mrf.mxu1 }
 0x23a   : > { %v4707_v24 = vadd.f32 %v1654_v20, %v1295_v18  ;;  %1814 = vmax.xlane.f32.xlu0 %v1813_v19  ;;  %v1308_v19 = vld [vmem:[%s5233_s2 + $0x100] sm:$0xff] }
 0x23b   : > { %v1658_v26 = vpop.f32.mrf.mxu1 }
 0x23c   : > { %v1816_v28 = vmax.f32 %v4705_v22, %v4707_v24  ;;  %v4717_v32 = vadd.f32 %v1658_v26, %v1296_v25  ;;  %v1309_v25 = vld [vmem:[%s5233_s2 + $0x108] sm:$0xff] }
 0x23d   : > { %v1660_v31 = vpop.f32.mrf.mxu1 }
 0x23e   : > { %v4719_v33 = vadd.f32 %v1660_v31, %v1297_v27  ;;  %1817 = vmax.xlane.f32.xlu1 %v1816_v28 }
 0x23f   : > { %v1664_v35 = vpop.f32.mrf.mxu1 }
 0x240   : > { %v1819_v39 = vmax.f32 %v4717_v32, %v4719_v33  ;;  %v4729_v45 = vadd.f32 %v1664_v35, %v1298_v34  ;;  %v1310_v34 = vld [vmem:[%s5233_s2 + $0x110] sm:$0xff] }
 0x241   : > { %v1666_v41 = vpop.f32.mrf.mxu1 }
 0x242   : > { %v4731_v47 = vadd.f32 %v1666_v41, %v1299_v38  ;;  %1820 = vmax.xlane.f32.xlu0 %v1819_v39  ;;  %v1311_v38 = vld [vmem:[%s5233_s2 + $0x118] sm:$0xff] }
 0x243   : > { %v1670_v53 = vpop.f32.mrf.mxu1 }
 0x244   : > { %v1822_v44 = vmax.f32 %v4729_v45, %v4731_v47  ;;  %v4741_v57 = vadd.f32 %v1670_v53, %v1300_v51 }
 0x245   : > { %v1672_v55 = vpop.f32.mrf.mxu1 }
 0x246   : > { %v4743_v49 = vadd.f32 %v1672_v55, %v1301_v54  ;;  %1823 = vmax.xlane.f32.xlu1 %v1822_v44  ;;  %v1312_v54 = vld [vmem:[%s5233_s2 + $0x120] sm:$0xff]  ;;  %v1313_v55 = vld [vmem:[%s5233_s2 + $0x128] sm:$0xff] }
 0x247   : > { %v1676_v59 = vpop.f32.mrf.mxu1 }
 0x248   : > { %v1825_v63 = vmax.f32 %v4741_v57, %v4743_v49  ;;  %v4753_v1 = vadd.f32 %v1676_v59, %v1302_v58 }
 0x249   : > { %v1678_v42 = vpop.f32.mrf.mxu1 }
 0x24a   : > { %v4755_v43 = vadd.f32 %v1678_v42, %v1303_v60  ;;  %1826 = vmax.xlane.f32.xlu0 %v1825_v63  ;;  %v1314_v42 = vld [vmem:[%s5233_s2 + $0x130] sm:$0xff] }
 0x24b   : > { %v1682_v4 = vpop.f32.mrf.mxu1 }
 0x24c   : > { %v1828_v5 = vmax.f32 %v4753_v1, %v4755_v43  ;;  %v4765_v6 = vadd.f32 %v1682_v4, %v1304_v3  ;;  %v1315_v4 = vld [vmem:[%s5233_s2 + $0x138] sm:$0xff] }
 0x24d   : > { %v1684_v0 = vpop.f32.mrf.mxu1 }
 0x24e   : > { %v4767_v9 = vadd.f32 %v1684_v0, %v1305_v62  ;;  %1829 = vmax.xlane.f32.xlu1 %v1828_v5 }
 0x24f   : > { %v1688_v11 = vpop.f32.mrf.mxu1 }
 0x250   : > { %v1831_v13 = vmax.f32 %v4765_v6, %v4767_v9  ;;  %v4777_v17 = vadd.f32 %v1688_v11, %v1306_v10  ;;  %v1316_v11 = vld [vmem:[%s5233_s2 + $0x140] sm:$0xff] }
 0x251   : > { %v1690_v16 = vpop.f32.mrf.mxu1 }
 0x252   : > { %v4779_v18 = vadd.f32 %v1690_v16, %v1307_v12  ;;  %1832 = vmax.xlane.f32.xlu0 %v1831_v13  ;;  %v1317_v13 = vld [vmem:[%s5233_s2 + $0x148] sm:$0xff] }
 0x253   : > { %v1694_v20 = vpop.f32.mrf.mxu1 }
 0x254   : > { %v1834_v26 = vmax.f32 %v4777_v17, %v4779_v18  ;;  %v4789_v28 = vadd.f32 %v1694_v20, %v1308_v19 }
 0x255   : > { %v1696_v27 = vpop.f32.mrf.mxu1 }
 0x256   : > { %v4791_v31 = vadd.f32 %v1696_v27, %v1309_v25  ;;  %1835 = vmax.xlane.f32.xlu1 %v1834_v26  ;;  %v1318_v26 = vld [vmem:[%s5233_s2 + $0x150] sm:$0xff] }
 0x257   : > { %v1700_v35 = vpop.f32.mrf.mxu1 }
 0x258   : > { %v1837_v39 = vmax.f32 %v4789_v28, %v4791_v31  ;;  %v4801_v51 = vadd.f32 %v1700_v35, %v1310_v34  ;;  %v1319_v34 = vld [vmem:[%s5233_s2 + $0x158] sm:$0xff] }
 0x259   : > { %v1702_v41 = vpop.f32.mrf.mxu1 }
 0x25a   : > { %v4803_v53 = vadd.f32 %v1702_v41, %v1311_v38  ;;  %1838 = vmax.xlane.f32.xlu0 %v1837_v39 }
 0x25b   : > { %v1706_v44 = vpop.f32.mrf.mxu1 }
 0x25c   : > { %v1840_v58 = vmax.f32 %v4801_v51, %v4803_v53  ;;  %v4813_v60 = vadd.f32 %v1706_v44, %v1312_v54  ;;  %v1320_v54 = vld [vmem:[%s5233_s2 + $0x160] sm:$0xff] }
 0x25d   : > { %v1708_v59 = vpop.f32.mrf.mxu1 }
 0x25e   : > { %v4815_v63 = vadd.f32 %v1708_v59, %v1313_v55  ;;  %1841 = vmax.xlane.f32.xlu1 %v1840_v58  ;;  %v1321_v55 = vld [vmem:[%s5233_s2 + $0x168] sm:$0xff] }
 0x25f   : > { %v1712_v3 = vpop.f32.mrf.mxu1 }
 0x260   : > { %v1843_v62 = vmax.f32 %v4813_v60, %v4815_v63  ;;  %v4825_v0 = vadd.f32 %v1712_v3, %v1314_v42 }
 0x261   : > { %v1714_v5 = vpop.f32.mrf.mxu1 }
 0x262   : > { %v4827_v10 = vadd.f32 %v1714_v5, %v1315_v4  ;;  %1844 = vmax.xlane.f32.xlu0 %v1843_v62  ;;  %v1322_v4 = vld [vmem:[%s5233_s2 + $0x170] sm:$0xff]  ;;  %v1323_v5 = vld [vmem:[%s5233_s2 + $0x178] sm:$0xff] }
 0x263   : > { %v1718_v12 = vpop.f32.mrf.mxu1 }
 0x264   : > { %v1846_v16 = vmax.f32 %v4825_v0, %v4827_v10  ;;  %v4837_v20 = vadd.f32 %v1718_v12, %v1316_v11 }
 0x265   : > { %v1720_v19 = vpop.f32.mrf.mxu1 }
 0x266   : > { %v4839_v25 = vadd.f32 %v1720_v19, %v1317_v13  ;;  %1847 = vmax.xlane.f32.xlu1 %v1846_v16  ;;  %v1324_v19 = vld [vmem:[%s5233_s2 + $0x180] sm:$0xff] }
 0x267   : > { %v1724_v27 = vpop.f32.mrf.mxu1 }
 0x268   : > { %v1849_v35 = vmax.f32 %v4837_v20, %v4839_v25  ;;  %v4849_v39 = vadd.f32 %v1724_v27, %v1318_v26  ;;  %v1325_v27 = vld [vmem:[%s5233_s2 + $0x188] sm:$0xff] }
 0x269   : > { %v1726_v38 = vpop.f32.mrf.mxu1 }
 0x26a   : > { %v4851_v41 = vadd.f32 %v1726_v38, %v1319_v34  ;;  %1850 = vmax.xlane.f32.xlu0 %v1849_v35 }
 0x26b   : > { %v1730_v44 = vpop.f32.mrf.mxu1 }
 0x26c   : > { %v1852_v58 = vmax.f32 %v4849_v39, %v4851_v41  ;;  %v4861_v42 = vadd.f32 %v1730_v44, %v1320_v54  ;;  %v1326_v44 = vld [vmem:[%s5233_s2 + $0x190] sm:$0xff] }
 0x26d   : > { %v1732_v59 = vpop.f32.mrf.mxu1 }
 0x26e   : > { %v4863_v3 = vadd.f32 %v1732_v59, %v1321_v55  ;;  %1853 = vmax.xlane.f32.xlu1 %v1852_v58  ;;  %v1327_v58 = vld [vmem:[%s5233_s2 + $0x198] sm:$0xff] }
 0x26f   : > { %v1736_v62 = vpop.f32.mrf.mxu1 }
 0x270   : > { %v1855_v11 = vmax.f32 %v4861_v42, %v4863_v3  ;;  %v4873_v13 = vadd.f32 %v1736_v62, %v1322_v4 }
 0x271   : > { %v1738_v12 = vpop.f32.mrf.mxu1 }
 0x272   : > { %v4875_v16 = vadd.f32 %v1738_v12, %v1323_v5  ;;  %1856 = vmax.xlane.f32.xlu0 %v1855_v11  ;;  %v1328_v11 = vld [vmem:[%s5233_s2 + $0x1a0] sm:$0xff] }
 0x273   : > { %v1742_v26 = vpop.f32.mrf.mxu1 }
 0x274   : > { %v1858_v34 = vmax.f32 %v4873_v13, %v4875_v16  ;;  %v4885_v38 = vadd.f32 %v1742_v26, %v1324_v19  ;;  %v1329_v19 = vld [vmem:[%s5233_s2 + $0x1a8] sm:$0xff] }
 0x275   : > { %v1744_v35 = vpop.f32.mrf.mxu1 }
 0x276   : > { %5256 = vst [vmem:[#allocation2_spill] sm:$0xff] %v4885_v38  ;;  %v4887_v54 = vadd.f32 %v1744_v35, %v1325_v27  ;;  %1859 = vmax.xlane.f32.xlu1 %v1858_v34 }
 0x277   : > { %v1748_v55 = vpop.f32.mrf.mxu1 }
 0x278   : > { %5257 = vst [vmem:[#allocation3_spill] sm:$0xff] %v4887_v54  ;;  %v1861_v59 = vmax.f32 %v4885_v38, %v4887_v54  ;;  %v4897_v62 = vadd.f32 %v1748_v55, %v1326_v44  ;;  %v1330_v44 = vld [vmem:[%s5233_s2 + $0x1b0] sm:$0xff] }
 0x279   : > { %v1750_v4 = vpop.f32.mrf.mxu1 }
 0x27a   : > { %5258 = vst [vmem:[#allocation4_spill] sm:$0xff] %v4897_v62  ;;  %v4899_v5 = vadd.f32 %v1750_v4, %v1327_v58  ;;  %1862 = vmax.xlane.f32.xlu0 %v1861_v59  ;;  %v1331_v58 = vld [vmem:[%s5233_s2 + $0x1b8] sm:$0xff] }
 0x27b   : > { %v1754_v12 = vpop.f32.mrf.mxu1 }
 0x27c   : > { %5259 = vst [vmem:[#allocation5_spill] sm:$0xff] %v4899_v5  ;;  %v1864_v26 = vmax.f32 %v4897_v62, %v4899_v5  ;;  %v4909_v34 = vadd.f32 %v1754_v12, %v1328_v11  ;;  %v1332_v12 = vld [vmem:[%s5233_s2 + $0x1c0] sm:$0xff] }
 0x27d   : > { %v1756_v27 = vpop.f32.mrf.mxu1 }
 0x27e   : > { %5260 = vst [vmem:[#allocation6_spill] sm:$0xff] %v4909_v34  ;;  %v4911_v35 = vadd.f32 %v1756_v27, %v1329_v19  ;;  %1865 = vmax.xlane.f32.xlu1 %v1864_v26  ;;  %v1333_v26 = vld [vmem:[%s5233_s2 + $0x1c8] sm:$0xff] }
 0x27f   : > { %v1760_v55 = vpop.f32.mrf.mxu1 }
 0x280   : > { %5261 = vst [vmem:[#allocation7_spill] sm:$0xff] %v4911_v35  ;;  %v1867_v59 = vmax.f32 %v4909_v34, %v4911_v35  ;;  %v4921_v5 = vadd.f32 %v1760_v55, %v1330_v44  ;;  %v1334_v55 = vld [vmem:[%s5233_s2 + $0x1d0] sm:$0xff] }
 0x281   : > { %v1762_v4 = vpop.f32.mrf.mxu1 }
 0x282   : > { %5262 = vst [vmem:[#allocation8_spill] sm:$0xff] %v4921_v5  ;;  %v4923_v11 = vadd.f32 %v1762_v4, %v1331_v58  ;;  %1868 = vmax.xlane.f32.xlu0 %v1867_v59  ;;  %v1335_v59 = vld [vmem:[%s5233_s2 + $0x1d8] sm:$0xff] }
 0x283   : > { %v1766_v19 = vpop.f32.mrf.mxu1 }
 0x284   : > { %5263 = vst [vmem:[#allocation9_spill] sm:$0xff] %v4923_v11  ;;  %v1870_v27 = vmax.f32 %v4921_v5, %v4923_v11  ;;  %v4933_v35 = vadd.f32 %v1766_v19, %v1332_v12 }
 0x285   : > { %v1768_v62 = vpop.f32.mrf.mxu1 }
 0x286   : > { %5264 = vst [vmem:[#allocation10_spill] sm:$0xff] %v4933_v35  ;;  %v4935_v44 = vadd.f32 %v1768_v62, %v1333_v26  ;;  %1871 = vmax.xlane.f32.xlu1 %v1870_v27  ;;  %v1336_v62 = vld [vmem:[%s5233_s2 + $0x1e0] sm:$0xff]  ;;  %v1337_v26 = vld [vmem:[%s5233_s2 + $0x1e8] sm:$0xff] }
 0x287   : > { %v1772_v58 = vpop.f32.mrf.mxu1 }
 0x288   : > { %5265 = vst [vmem:[#allocation11_spill] sm:$0xff] %v4935_v44  ;;  %v1873_v4 = vmax.f32 %v4933_v35, %v4935_v44  ;;  %v4945_v11 = vadd.f32 %v1772_v58, %v1334_v55 }
 0x289   : > { %v1774_v34 = vpop.f32.mrf.mxu1 }
 0x28a   : > { %5266 = vst [vmem:[#allocation12_spill] sm:$0xff] %v4945_v11  ;;  %v4947_v12 = vadd.f32 %v1774_v34, %v1335_v59  ;;  %1874 = vmax.xlane.f32.xlu0 %v1873_v4  ;;  %v1338_v34 = vld [vmem:[%s5233_s2 + $0x1f0] sm:$0xff]  ;;  %v1339_v59 = vld [vmem:[%s5233_s2 + $0x1f8] sm:$0xff] }
 0x28b   : > { %v1778_v19 = vpop.f32.mrf.mxu1 }
 0x28c   : > { %5267 = vst [vmem:[#allocation13_spill] sm:$0xff] %v4947_v12  ;;  %v1876_v27 = vmax.f32 %v4945_v11, %v4947_v12  ;;  %v4957_v44 = vadd.f32 %v1778_v19, %v1336_v62 }
 0x28d   : > { %v1780_v5 = vpop.f32.mrf.mxu1 }
 0x28e   : > { %v4959_v55 = vadd.f32 %v1780_v5, %v1337_v26  ;;  %1877 = vmax.xlane.f32.xlu1 %v1876_v27 }
 0x28f   : > { %v1784_v58 = vpop.f32.mrf.mxu1 }
 0x290   : > { %5268 = vst [vmem:[#allocation14_spill] sm:$0xff] %v4959_v55  ;;  %v1879_v4 = vmax.f32 %v4957_v44, %v4959_v55  ;;  %v4969_v12 = vadd.f32 %v1784_v58, %v1338_v34 }
 0x291   : > { %v1786_v35 = vpop.f32.mrf.mxu1 }
 0x292   : > { %v4971_v62 = vadd.f32 %v1786_v35, %v1339_v59  ;;  %1880 = vmax.xlane.f32.xlu0 %v1879_v4 }
 0x294   : > { %v1882_v5 = vmax.f32 %v4969_v12, %v4971_v62 }
 0x296   : > { %1883 = vmax.xlane.f32.xlu1 %v1882_v5 }
 0x2a3   : > { %v1791_v19 = vpop.xlane.xlu0 %1790 }
 0x2a4   : > { %v1885_v26 = vsub.f32 %v4597_v23, %v1791_v19  ;;  %v1886_v27 = vsub.f32 %v4599_v21, %v1791_v19 }
 0x2a6   : > { %v1949_v11 = vmul.f32 1.442695, %v1885_v26  ;;  %v1951_v54 = vmul.f32 1.442695, %v1886_v27 }
 0x2a7   : > { %v1794_v38 = vpop.xlane.xlu0 %1793 }
 0x2a8   : > { %3642 = vpow2.f32 %v1949_v11  ;;  %v1887_v55 = vsub.f32 %v4609_v29, %v1794_v38  ;;  %v1888_v34 = vsub.f32 %v4611_v30, %v1794_v38 }
 0x2a9   : > { %3644 = vpow2.f32 %v1951_v54 }
 0x2aa   : > { %v1953_v35 = vmul.f32 1.442695, %v1887_v55  ;;  %v1955_v58 = vmul.f32 1.442695, %v1888_v34 }
 0x2ab   : > { %v1797_v59 = vpop.xlane.xlu1 %1796 }
 0x2ac   : > { %3646 = vpow2.f32 %v1953_v35  ;;  %v1889_v4 = vsub.f32 %v4621_v36, %v1797_v59  ;;  %v1890_v5 = vsub.f32 %v4623_v37, %v1797_v59  ;;  %v2465_v37 = vld [vmem:[%s5240_s9 + $0x18] sm:$0xff] }
 0x2ad   : > { %3648 = vpow2.f32 %v1955_v58  ;;  %3577 = vmatprep.subr.mxu1 %v2465_v37 }
 0x2ae   : > { %v1957_v23 = vmul.f32 1.442695, %v1889_v4  ;;  %v1959_v21 = vmul.f32 1.442695, %v1890_v5  ;;  %3578 = vmatpush3.msra.mxu1 %v2465_v37 }
 0x2af   : > { %v1800_v19 = vpop.xlane.xlu1 %1799 }
 0x2b0   : > { %3650 = vpow2.f32 %v1957_v23  ;;  %v1891_v11 = vsub.f32 %v4633_v48, %v1800_v19  ;;  %v1892_v29 = vsub.f32 %v4635_v50, %v1800_v19 }
 0x2b1   : > { %3652 = vpow2.f32 %v1959_v21 }
 0x2b2   : > { %v1961_v30 = vmul.f32 1.442695, %v1891_v11  ;;  %v1963_v38 = vmul.f32 1.442695, %v1892_v29 }
 0x2b3   : > { %v1803_v54 = vpop.xlane.xlu0 %1802 }
 0x2b4   : > { %3654 = vpow2.f32 %v1961_v30  ;;  %v1893_v55 = vsub.f32 %v4645_v46, %v1803_v54  ;;  %v1894_v36 = vsub.f32 %v4647_v56, %v1803_v54 }
 0x2b5   : > { %v3643_v26 = vpop.eup %3642  ;;  %3656 = vpow2.f32 %v1963_v38 }
 0x2b6   : > { %v3645_v27 = vpop.eup %3644  ;;  %v1965_v34 = vmul.f32 1.442695, %v1893_v55  ;;  %v1967_v48 = vmul.f32 1.442695, %v1894_v36 }
 0x2b7   : > { %2237 = vmatprep.mubr.f32.mxu0 %v3645_v27  ;;  %v1806_v50 = vpop.xlane.xlu1 %1805  ;;  %v2077_v35 = vadd.f32 %v3645_v27, %v3643_v26 }
 0x2b8   : > { %3658 = vpow2.f32 %v1965_v34  ;;  %v1895_v58 = vsub.f32 %v4657_v40, %v1806_v50  ;;  %v1896_v46 = vsub.f32 %v4659_v61, %v1806_v50  ;;  %2238 = vmatmul.mubr.f32.vlgmr.msra.gmra.mxu0 %v3643_v26 }
 0x2b9   : > { %v3647_v56 = vpop.eup %3646  ;;  %3660 = vpow2.f32 %v1967_v48  ;;  %2078 = vadd.xlane.f32.xlu0 %v2077_v35 }
 0x2ba   : > { %v3649_v59 = vpop.eup %3648  ;;  %v1969_v4 = vmul.f32 1.442695, %v1895_v58  ;;  %v1971_v5 = vmul.f32 1.442695, %v1896_v46 }
 0x2bb   : > { %2242 = vmatprep.mubr.f32.mxu0 %v3649_v59  ;;  %v1809_v23 = vpop.xlane.xlu0 %1808  ;;  %v2080_v21 = vadd.f32 %v3649_v59, %v3647_v56 }
 0x2bc   : > { %3662 = vpow2.f32 %v1969_v4  ;;  %2243 = vmatmul.mubr.f32.gmra.mxu0 %v3647_v56  ;;  %v1897_v19 = vsub.f32 %v4669_v2, %v1809_v23  ;;  %v1898_v11 = vsub.f32 %v4671_v52, %v1809_v23 }
 0x2bd   : > { %v3651_v29 = vpop.eup %3650  ;;  %3664 = vpow2.f32 %v1971_v5  ;;  %2081 = vadd.xlane.f32.xlu1 %v2080_v21 }
 0x2be   : > { %v3653_v40 = vpop.eup %3652  ;;  %v1973_v61 = vmul.f32 1.442695, %v1897_v19  ;;  %v1975_v30 = vmul.f32 1.442695, %v1898_v11 }
 0x2bf   : > { %2247 = vmatprep.mubr.f32.mxu0 %v3653_v40  ;;  %v1812_v38 = vpop.xlane.xlu1 %1811  ;;  %v2083_v54 = vadd.f32 %v3653_v40, %v3651_v29 }
 0x2c0   : > { %3666 = vpow2.f32 %v1973_v61  ;;  %v1899_v55 = vsub.f32 %v4681_v7, %v1812_v38  ;;  %v1900_v36 = vsub.f32 %v4683_v8, %v1812_v38  ;;  %2248 = vmatmul.mubr.f32.gmra.mxu0 %v3651_v29 }
 0x2c1   : > { %v3655_v26 = vpop.eup %3654  ;;  %3668 = vpow2.f32 %v1975_v30  ;;  %2084 = vadd.xlane.f32.xlu0 %v2083_v54 }
 0x2c2   : > { %v3657_v2 = vpop.eup %3656  ;;  %v1977_v52 = vmul.f32 1.442695, %v1899_v55  ;;  %v1979_v37 = vmul.f32 1.442695, %v1900_v36 }
 0x2c3   : > { %2252 = vmatprep.mubr.f32.mxu0 %v3657_v2  ;;  %v1815_v27 = vpop.xlane.xlu0 %1814  ;;  %v2086_v34 = vadd.f32 %v3657_v2, %v3655_v26 }
 0x2c4   : > { %3670 = vpow2.f32 %v1977_v52  ;;  %2253 = vmatmul.mubr.f32.gmra.mxu0 %v3655_v26  ;;  %v1901_v48 = vsub.f32 %v4693_v14, %v1815_v27  ;;  %v1902_v50 = vsub.f32 %v4695_v15, %v1815_v27 }
 0x2c5   : > { %v3659_v35 = vpop.eup %3658  ;;  %3672 = vpow2.f32 %v1979_v37  ;;  %2087 = vadd.xlane.f32.xlu1 %v2086_v34 }
 0x2c6   : > { %v3661_v7 = vpop.eup %3660  ;;  %v1981_v8 = vmul.f32 1.442695, %v1901_v48  ;;  %v1983_v58 = vmul.f32 1.442695, %v1902_v50 }
 0x2c7   : > { %2257 = vmatprep.mubr.f32.mxu0 %v3661_v7  ;;  %v1818_v46 = vpop.xlane.xlu1 %1817  ;;  %v2089_v56 = vadd.f32 %v3661_v7, %v3659_v35 }
 0x2c8   : > { %3674 = vpow2.f32 %v1981_v8  ;;  %v1903_v59 = vsub.f32 %v4705_v22, %v1818_v46  ;;  %v1904_v4 = vsub.f32 %v4707_v24, %v1818_v46  ;;  %2258 = vmatmul.mubr.f32.gmra.mxu0 %v3659_v35 }
 0x2c9   : > { %v3663_v5 = vpop.eup %3662  ;;  %3676 = vpow2.f32 %v1983_v58  ;;  %2090 = vadd.xlane.f32.xlu0 %v2089_v56 }
 0x2ca   : > { %v3665_v14 = vpop.eup %3664  ;;  %v1985_v15 = vmul.f32 1.442695, %v1903_v59  ;;  %v1987_v23 = vmul.f32 1.442695, %v1904_v4  ;;  %v2464_v4 = vld [vmem:[%s5240_s9 + $0x10] sm:$0xff] }
 0x2cb   : > { %2262 = vmatprep.mubr.f32.mxu0 %v3665_v14  ;;  %v1821_v21 = vpop.xlane.xlu0 %1820  ;;  %v2092_v19 = vadd.f32 %v3665_v14, %v3663_v5  ;;  %3579 = vmatprep.subr.mxu1 %v2464_v4 }
 0x2cc   : > { %3678 = vpow2.f32 %v1985_v15  ;;  %2263 = vmatmul.mubr.f32.gmra.mxu0 %v3663_v5  ;;  %v1905_v11 = vsub.f32 %v4717_v32, %v1821_v21  ;;  %v1906_v29 = vsub.f32 %v4719_v33, %v1821_v21  ;;  %3580 = vmatpush3.msra.mxu1 %v2464_v4 }
 0x2cd   : > { %v3667_v40 = vpop.eup %3666  ;;  %3680 = vpow2.f32 %v1987_v23  ;;  %2093 = vadd.xlane.f32.xlu1 %v2092_v19 }
 0x2ce   : > { %v3669_v22 = vpop.eup %3668  ;;  %v1989_v24 = vmul.f32 1.442695, %v1905_v11  ;;  %v1991_v61 = vmul.f32 1.442695, %v1906_v29 }
 0x2cf   : > { %2267 = vmatprep.mubr.f32.mxu0 %v3669_v22  ;;  %v1824_v30 = vpop.xlane.xlu1 %1823  ;;  %v2095_v38 = vadd.f32 %v3669_v22, %v3667_v40 }
 0x2d0   : > { %3682 = vpow2.f32 %v1989_v24  ;;  %v1907_v54 = vsub.f32 %v4729_v45, %v1824_v30  ;;  %v1908_v55 = vsub.f32 %v4731_v47, %v1824_v30  ;;  %2268 = vmatmul.mubr.f32.gmra.mxu0 %v3667_v40 }
 0x2d1   : > { %v3671_v36 = vpop.eup %3670  ;;  %3684 = vpow2.f32 %v1991_v61  ;;  %2096 = vadd.xlane.f32.xlu0 %v2095_v38 }
 0x2d2   : > { %v3673_v32 = vpop.eup %3672  ;;  %v1993_v33 = vmul.f32 1.442695, %v1907_v54  ;;  %v1995_v26 = vmul.f32 1.442695, %v1908_v55 }
 0x2d3   : > { %2272 = vmatprep.mubr.f32.mxu0 %v3673_v32  ;;  %v1827_v2 = vpop.xlane.xlu0 %1826  ;;  %v2098_v52 = vadd.f32 %v3673_v32, %v3671_v36 }
 0x2d4   : > { %3686 = vpow2.f32 %v1993_v33  ;;  %2273 = vmatmul.mubr.f32.gmra.mxu0 %v3671_v36  ;;  %v1909_v37 = vsub.f32 %v4741_v57, %v1827_v2  ;;  %v1910_v27 = vsub.f32 %v4743_v49, %v1827_v2 }
 0x2d5   : > { %v3675_v34 = vpop.eup %3674  ;;  %3688 = vpow2.f32 %v1995_v26  ;;  %2099 = vadd.xlane.f32.xlu1 %v2098_v52 }
 0x2d6   : > { %v3677_v45 = vpop.eup %3676  ;;  %v1997_v47 = vmul.f32 1.442695, %v1909_v37  ;;  %v1999_v48 = vmul.f32 1.442695, %v1910_v27 }
 0x2d7   : > { %2277 = vmatprep.mubr.f32.mxu0 %v3677_v45  ;;  %v1830_v50 = vpop.xlane.xlu1 %1829  ;;  %v2101_v35 = vadd.f32 %v3677_v45, %v3675_v34 }
 0x2d8   : > { %3690 = vpow2.f32 %v1997_v47  ;;  %v1911_v7 = vsub.f32 %v4753_v1, %v1830_v50  ;;  %v1912_v8 = vsub.f32 %v4755_v43, %v1830_v50  ;;  %2278 = vmatmul.mubr.f32.gmra.mxu0 %v3675_v34 }
 0x2d9   : > { %v3679_v58 = vpop.eup %3678  ;;  %3692 = vpow2.f32 %v1999_v48  ;;  %2102 = vadd.xlane.f32.xlu0 %v2101_v35 }
 0x2da   : > { %v3681_v57 = vpop.eup %3680  ;;  %v2001_v49 = vmul.f32 1.442695, %v1911_v7  ;;  %v2003_v46 = vmul.f32 1.442695, %v1912_v8 }
 0x2db   : > { %2282 = vmatprep.mubr.f32.mxu0 %v3681_v57  ;;  %v1833_v56 = vpop.xlane.xlu0 %1832  ;;  %v2104_v59 = vadd.f32 %v3681_v57, %v3679_v58 }
 0x2dc   : > { %3694 = vpow2.f32 %v2001_v49  ;;  %2283 = vmatmul.mubr.f32.gmra.mxu0 %v3679_v58  ;;  %v1913_v1 = vsub.f32 %v4765_v6, %v1833_v56  ;;  %v1914_v43 = vsub.f32 %v4767_v9, %v1833_v56 }
 0x2dd   : > { %v3683_v5 = vpop.eup %3682  ;;  %3696 = vpow2.f32 %v2003_v46  ;;  %2105 = vadd.xlane.f32.xlu1 %v2104_v59 }
 0x2de   : > { %v3685_v14 = vpop.eup %3684  ;;  %v2005_v15 = vmul.f32 1.442695, %v1913_v1  ;;  %v2007_v23 = vmul.f32 1.442695, %v1914_v43 }
 0x2df   : > { %2287 = vmatprep.mubr.f32.mxu0 %v3685_v14  ;;  %v1836_v21 = vpop.xlane.xlu1 %1835  ;;  %v2107_v19 = vadd.f32 %v3685_v14, %v3683_v5 }
 0x2e0   : > { %3698 = vpow2.f32 %v2005_v15  ;;  %v1915_v11 = vsub.f32 %v4777_v17, %v1836_v21  ;;  %v1916_v29 = vsub.f32 %v4779_v18, %v1836_v21  ;;  %2288 = vmatmul.mubr.f32.gmra.mxu0 %v3683_v5 }
 0x2e1   : > { %v3687_v6 = vpop.eup %3686  ;;  %3700 = vpow2.f32 %v2007_v23  ;;  %2108 = vadd.xlane.f32.xlu0 %v2107_v19  ;;  %v2463_v19 = vld [vmem:[%s5240_s9 + $0x8] sm:$0xff] }
 0x2e2   : > { %v3689_v9 = vpop.eup %3688  ;;  %v2009_v40 = vmul.f32 1.442695, %v1915_v11  ;;  %v2011_v22 = vmul.f32 1.442695, %v1916_v29  ;;  %3581 = vmatprep.subr.mxu1 %v2463_v19 }
 0x2e3   : > { %2292 = vmatprep.mubr.f32.mxu0 %v3689_v9  ;;  %v1839_v24 = vpop.xlane.xlu0 %1838  ;;  %v2110_v61 = vadd.f32 %v3689_v9, %v3687_v6  ;;  %3582 = vmatpush3.msra.mxu1 %v2463_v19 }
 0x2e4   : > { %3702 = vpow2.f32 %v2009_v40  ;;  %2293 = vmatmul.mubr.f32.gmra.mxu0 %v3687_v6  ;;  %v1917_v30 = vsub.f32 %v4789_v28, %v1839_v24  ;;  %v1918_v38 = vsub.f32 %v4791_v31, %v1839_v24  ;;  %v2462_v6 = vld [vmem:[%s5240_s9] sm:$0xff] }
 0x2e5   : > { %v3691_v54 = vpop.eup %3690  ;;  %3704 = vpow2.f32 %v2011_v22  ;;  %2111 = vadd.xlane.f32.xlu1 %v2110_v61  ;;  %3583 = vmatprep.subr.mxu1 %v2462_v6 }
 0x2e6   : > { %v3693_v17 = vpop.eup %3692  ;;  %v2013_v18 = vmul.f32 1.442695, %v1917_v30  ;;  %v2015_v55 = vmul.f32 1.442695, %v1918_v38  ;;  %3584 = vmatpush3.msra.mxu1 %v2462_v6 }
 0x2e7   : > { %2297 = vmatprep.mubr.f32.mxu0 %v3693_v17  ;;  %v1842_v36 = vpop.xlane.xlu1 %1841  ;;  %v2113_v32 = vadd.f32 %v3693_v17, %v3691_v54 }
 0x2e8   : > { %3706 = vpow2.f32 %v2013_v18  ;;  %v1919_v33 = vsub.f32 %v4801_v51, %v1842_v36  ;;  %v1920_v26 = vsub.f32 %v4803_v53, %v1842_v36  ;;  %2298 = vmatmul.mubr.f32.gmra.mxu0 %v3691_v54 }
 0x2e9   : > { %v3695_v2 = vpop.eup %3694  ;;  %3708 = vpow2.f32 %v2015_v55  ;;  %2114 = vadd.xlane.f32.xlu0 %v2113_v32  ;;  %v5269_v32 = vld [vmem:[#allocation2_spill] sm:$0xff] }
 0x2ea   : > { %v3697_v28 = vpop.eup %3696  ;;  %v2017_v31 = vmul.f32 1.442695, %v1919_v33  ;;  %v2019_v52 = vmul.f32 1.442695, %v1920_v26  ;;  %v5270_v26 = vld [vmem:[#allocation3_spill] sm:$0xff] }
 0x2eb   : > { %2302 = vmatprep.mubr.f32.mxu0 %v3697_v28  ;;  %v1845_v37 = vpop.xlane.xlu0 %1844  ;;  %v2116_v27 = vadd.f32 %v3697_v28, %v3695_v2 }
 0x2ec   : > { %3710 = vpow2.f32 %v2017_v31  ;;  %2303 = vmatmul.mubr.f32.gmra.mxu0 %v3695_v2  ;;  %v1921_v34 = vsub.f32 %v4813_v60, %v1845_v37  ;;  %v1922_v45 = vsub.f32 %v4815_v63, %v1845_v37 }
 0x2ed   : > { %v3699_v47 = vpop.eup %3698  ;;  %3712 = vpow2.f32 %v2019_v52  ;;  %2117 = vadd.xlane.f32.xlu1 %v2116_v27  ;;  %v5271_v27 = vld [vmem:[#allocation4_spill] sm:$0xff] }
 0x2ee   : > { %v3701_v51 = vpop.eup %3700  ;;  %v2021_v53 = vmul.f32 1.442695, %v1921_v34  ;;  %v2023_v48 = vmul.f32 1.442695, %v1922_v45  ;;  %v5272_v45 = vld [vmem:[#allocation5_spill] sm:$0xff] }
 0x2ef   : > { %2307 = vmatprep.mubr.f32.mxu0 %v3701_v51  ;;  %v1848_v50 = vpop.xlane.xlu1 %1847  ;;  %v2119_v35 = vadd.f32 %v3701_v51, %v3699_v47 }
 0x2f0   : > { %3714 = vpow2.f32 %v2021_v53  ;;  %v1923_v7 = vsub.f32 %v4825_v0, %v1848_v50  ;;  %v1924_v8 = vsub.f32 %v4827_v10, %v1848_v50  ;;  %2308 = vmatmul.mubr.f32.gmra.mxu0 %v3699_v47 }
 0x2f1   : > { %v3703_v58 = vpop.eup %3702  ;;  %3716 = vpow2.f32 %v2023_v48  ;;  %2120 = vadd.xlane.f32.xlu0 %v2119_v35 }
 0x2f2   : > { %v3705_v60 = vpop.eup %3704  ;;  %v2025_v63 = vmul.f32 1.442695, %v1923_v7  ;;  %v2027_v57 = vmul.f32 1.442695, %v1924_v8  ;;  %v5273_v8 = vld [vmem:[#allocation6_spill] sm:$0xff] }
 0x2f3   : > { %2312 = vmatprep.mubr.f32.mxu0 %v3705_v60  ;;  %v1851_v49 = vpop.xlane.xlu0 %1850  ;;  %v2122_v46 = vadd.f32 %v3705_v60, %v3703_v58  ;;  %v5274_v60 = vld [vmem:[#allocation7_spill] sm:$0xff] }
 0x2f4   : > { %3718 = vpow2.f32 %v2025_v63  ;;  %2313 = vmatmul.mubr.f32.gmra.mxu0 %v3703_v58  ;;  %v1925_v56 = vsub.f32 %v4837_v20, %v1851_v49  ;;  %v1926_v59 = vsub.f32 %v4839_v25, %v1851_v49 }
 0x2f5   : > { %v3707_v4 = vpop.eup %3706  ;;  %3720 = vpow2.f32 %v2027_v57  ;;  %2123 = vadd.xlane.f32.xlu1 %v2122_v46 }
 0x2f6   : > { %v3709_v0 = vpop.eup %3708  ;;  %v2029_v10 = vmul.f32 1.442695, %v1925_v56  ;;  %v2031_v1 = vmul.f32 1.442695, %v1926_v59 }
 0x2f7   : > { %2317 = vmatprep.mubr.f32.mxu0 %v3709_v0  ;;  %v1854_v43 = vpop.xlane.xlu1 %1853  ;;  %v2125_v5 = vadd.f32 %v3709_v0, %v3707_v4  ;;  %v5275_v0 = vld [vmem:[#allocation8_spill] sm:$0xff] }
 0x2f8   : > { %3722 = vpow2.f32 %v2029_v10  ;;  %v1927_v14 = vsub.f32 %v4849_v39, %v1854_v43  ;;  %v1928_v15 = vsub.f32 %v4851_v41, %v1854_v43  ;;  %2318 = vmatmul.mubr.f32.gmra.mxu0 %v3707_v4 }
 0x2f9   : > { %v3711_v23 = vpop.eup %3710  ;;  %3724 = vpow2.f32 %v2031_v1  ;;  %2126 = vadd.xlane.f32.xlu0 %v2125_v5  ;;  %v5276_v1 = vld [vmem:[#allocation9_spill] sm:$0xff] }
 0x2fa   : > { %v3713_v20 = vpop.eup %3712  ;;  %v2033_v25 = vmul.f32 1.442695, %v1927_v14  ;;  %v2035_v21 = vmul.f32 1.442695, %v1928_v15 }
 0x2fb   : > { %2322 = vmatprep.mubr.f32.mxu0 %v3713_v20  ;;  %v1857_v11 = vpop.xlane.xlu0 %1856  ;;  %v2128_v29 = vadd.f32 %v3713_v20, %v3711_v23 }
 0x2fc   : > { %3726 = vpow2.f32 %v2033_v25  ;;  %2323 = vmatmul.mubr.f32.gmra.mxu0 %v3711_v23  ;;  %v1929_v39 = vsub.f32 %v4861_v42, %v1857_v11  ;;  %v1930_v41 = vsub.f32 %v4863_v3, %v1857_v11  ;;  %v5278_v11 = vld [vmem:[#allocation11_spill] sm:$0xff] }
 0x2fd   : > { %v3715_v9 = vpop.eup %3714  ;;  %3728 = vpow2.f32 %v2035_v21  ;;  %2129 = vadd.xlane.f32.xlu1 %v2128_v29  ;;  %v5277_v21 = vld [vmem:[#allocation10_spill] sm:$0xff] }
 0x2fe   : > { %v3717_v40 = vpop.eup %3716  ;;  %v2037_v22 = vmul.f32 1.442695, %v1929_v39  ;;  %v2039_v24 = vmul.f32 1.442695, %v1930_v41 }
 0x2ff   : > { %2327 = vmatprep.mubr.f32.mxu0 %v3717_v40  ;;  %v1860_v61 = vpop.xlane.xlu1 %1859  ;;  %v2131_v30 = vadd.f32 %v3717_v40, %v3715_v9 }
 0x300   : > { %3730 = vpow2.f32 %v2037_v22  ;;  %v1931_v42 = vsub.f32 %v4873_v13, %v1860_v61  ;;  %v1932_v3 = vsub.f32 %v4875_v16, %v1860_v61  ;;  %2328 = vmatmul.mubr.f32.gmra.mxu0 %v3715_v9 }
 0x301   : > { %v3719_v38 = vpop.eup %3718  ;;  %3732 = vpow2.f32 %v2039_v24  ;;  %2132 = vadd.xlane.f32.xlu0 %v2131_v30  ;;  %v5279_v24 = vld [vmem:[#allocation12_spill] sm:$0xff]  ;;  %v5280_v30 = vld [vmem:[#allocation13_spill] sm:$0xff] }
 0x302   : > { %v3721_v54 = vpop.eup %3720  ;;  %v2041_v17 = vmul.f32 1.442695, %v1931_v42  ;;  %v2043_v18 = vmul.f32 1.442695, %v1932_v3 }
 0x303   : > { %2332 = vmatprep.mubr.f32.mxu0 %v3721_v54  ;;  %v1863_v55 = vpop.xlane.xlu0 %1862  ;;  %v2134_v36 = vadd.f32 %v3721_v54, %v3719_v38 }
 0x304   : > { %3734 = vpow2.f32 %v2041_v17  ;;  %2333 = vmatmul.mubr.f32.gmra.mxu0 %v3719_v38  ;;  %v1933_v33 = vsub.f32 %v5269_v32, %v1863_v55  ;;  %v1934_v2 = vsub.f32 %v5270_v26, %v1863_v55  ;;  %v5281_v32 = vld [vmem:[#allocation14_spill] sm:$0xff] }
 0x305   : > { %v3723_v28 = vpop.eup %3722  ;;  %3736 = vpow2.f32 %v2043_v18  ;;  %2135 = vadd.xlane.f32.xlu1 %v2134_v36 }
 0x306   : > { %v3725_v13 = vpop.eup %3724  ;;  %v2045_v16 = vmul.f32 1.442695, %v1933_v33  ;;  %v2047_v31 = vmul.f32 1.442695, %v1934_v2 }
 0x307   : > { %2337 = vmatprep.mubr.f32.mxu0 %v3725_v13  ;;  %v1866_v52 = vpop.xlane.xlu1 %1865  ;;  %v2137_v37 = vadd.f32 %v3725_v13, %v3723_v28 }
 0x308   : > { %3738 = vpow2.f32 %v2045_v16  ;;  %v1935_v34 = vsub.f32 %v5271_v27, %v1866_v52  ;;  %v1936_v47 = vsub.f32 %v5272_v45, %v1866_v52  ;;  %2338 = vmatmul.mubr.f32.gmra.mxu0 %v3723_v28 }
 0x309   : > { %v3727_v51 = vpop.eup %3726  ;;  %3740 = vpow2.f32 %v2047_v31  ;;  %2138 = vadd.xlane.f32.xlu0 %v2137_v37 }
 0x30a   : > { %v3729_v53 = vpop.eup %3728  ;;  %v2049_v48 = vmul.f32 1.442695, %v1935_v34  ;;  %v2051_v50 = vmul.f32 1.442695, %v1936_v47 }
 0x30b   : > { %2342 = vmatprep.mubr.f32.mxu0 %v3729_v53  ;;  %v1869_v35 = vpop.xlane.xlu0 %1868  ;;  %v2140_v7 = vadd.f32 %v3729_v53, %v3727_v51 }
 0x30c   : > { %3742 = vpow2.f32 %v2049_v48  ;;  %2343 = vmatmul.mubr.f32.gmra.mxu0 %v3727_v51  ;;  %v1937_v58 = vsub.f32 %v5273_v8, %v1869_v35  ;;  %v1938_v63 = vsub.f32 %v5274_v60, %v1869_v35 }
 0x30d   : > { %v3731_v57 = vpop.eup %3730  ;;  %3744 = vpow2.f32 %v2051_v50  ;;  %2141 = vadd.xlane.f32.xlu1 %v2140_v7 }
 0x30e   : > { %v3733_v49 = vpop.eup %3732  ;;  %v2053_v46 = vmul.f32 1.442695, %v1937_v58  ;;  %v2055_v56 = vmul.f32 1.442695, %v1938_v63 }
 0x30f   : > { %2347 = vmatprep.mubr.f32.mxu0 %v3733_v49  ;;  %v1872_v59 = vpop.xlane.xlu1 %1871  ;;  %v2143_v4 = vadd.f32 %v3733_v49, %v3731_v57 }
 0x310   : > { %3746 = vpow2.f32 %v2053_v46  ;;  %v1939_v10 = vsub.f32 %v5275_v0, %v1872_v59  ;;  %v1940_v43 = vsub.f32 %v5276_v1, %v1872_v59  ;;  %2348 = vmatmul.mubr.f32.gmra.mxu0 %v3731_v57 }
 0x311   : > { %v3735_v5 = vpop.eup %3734  ;;  %3748 = vpow2.f32 %v2055_v56  ;;  %2144 = vadd.xlane.f32.xlu0 %v2143_v4 }
 0x312   : > { %v3737_v14 = vpop.eup %3736  ;;  %v2057_v15 = vmul.f32 1.442695, %v1939_v10  ;;  %v2059_v23 = vmul.f32 1.442695, %v1940_v43 }
 0x313   : > { %2352 = vmatprep.mubr.f32.mxu0 %v3737_v14  ;;  %v1875_v20 = vpop.xlane.xlu0 %1874  ;;  %v2146_v25 = vadd.f32 %v3737_v14, %v3735_v5 }
 0x314   : > { %3750 = vpow2.f32 %v2057_v15  ;;  %2353 = vmatmul.mubr.f32.gmra.mxu0 %v3735_v5  ;;  %v1941_v19 = vsub.f32 %v5277_v21, %v1875_v20  ;;  %v1942_v29 = vsub.f32 %v5278_v11, %v1875_v20 }
 0x315   : > { %v3739_v39 = vpop.eup %3738  ;;  %3752 = vpow2.f32 %v2059_v23  ;;  %2147 = vadd.xlane.f32.xlu1 %v2146_v25 }
 0x316   : > { %v3741_v41 = vpop.eup %3740  ;;  %v2061_v6 = vmul.f32 1.442695, %v1941_v19  ;;  %v2063_v9 = vmul.f32 1.442695, %v1942_v29 }
 0x317   : > { %2357 = vmatprep.mubr.f32.mxu0 %v3741_v41  ;;  %v1878_v40 = vpop.xlane.xlu1 %1877  ;;  %v2149_v22 = vadd.f32 %v3741_v41, %v3739_v39 }
 0x318   : > { %3754 = vpow2.f32 %v2061_v6  ;;  %v1943_v61 = vsub.f32 %v5279_v24, %v1878_v40  ;;  %v1944_v42 = vsub.f32 %v5280_v30, %v1878_v40  ;;  %2358 = vmatmul.mubr.f32.gmra.mxu0 %v3739_v39 }
 0x319   : > { %v3743_v3 = vpop.eup %3742  ;;  %3756 = vpow2.f32 %v2063_v9  ;;  %2150 = vadd.xlane.f32.xlu0 %v2149_v22 }
 0x31a   : > { %v3745_v38 = vpop.eup %3744  ;;  %v2065_v54 = vmul.f32 1.442695, %v1943_v61  ;;  %v2067_v17 = vmul.f32 1.442695, %v1944_v42 }
 0x31b   : > { %2362 = vmatprep.mubr.f32.mxu0 %v3745_v38  ;;  %v1881_v18 = vpop.xlane.xlu0 %1880  ;;  %v2152_v55 = vadd.f32 %v3745_v38, %v3743_v3 }
 0x31c   : > { %3758 = vpow2.f32 %v2065_v54  ;;  %2363 = vmatmul.mubr.f32.gmra.mxu0 %v3743_v3  ;;  %v1945_v36 = vsub.f32 %v4957_v44, %v1881_v18  ;;  %v1946_v33 = vsub.f32 %v5281_v32, %v1881_v18 }
 0x31d   : > { %v3747_v26 = vpop.eup %3746  ;;  %3760 = vpow2.f32 %v2067_v17  ;;  %2153 = vadd.xlane.f32.xlu1 %v2152_v55 }
 0x31e   : > { %v3749_v2 = vpop.eup %3748  ;;  %v2069_v28 = vmul.f32 1.442695, %v1945_v36  ;;  %v2071_v13 = vmul.f32 1.442695, %v1946_v33 }
 0x31f   : > { %2367 = vmatprep.mubr.f32.mxu0 %v3749_v2  ;;  %v1884_v16 = vpop.xlane.xlu1 %1883  ;;  %v2155_v31 = vadd.f32 %v3749_v2, %v3747_v26 }
 0x320   : > { %3762 = vpow2.f32 %v2069_v28  ;;  %v1947_v52 = vsub.f32 %v4969_v12, %v1884_v16  ;;  %v1948_v37 = vsub.f32 %v4971_v62, %v1884_v16  ;;  %2368 = vmatmul.mubr.f32.gmra.mxu0 %v3747_v26 }
 0x321   : > { %v3751_v27 = vpop.eup %3750  ;;  %3764 = vpow2.f32 %v2071_v13  ;;  %2156 = vadd.xlane.f32.xlu0 %v2155_v31 }
 0x322   : > { %v3753_v44 = vpop.eup %3752  ;;  %v2073_v34 = vmul.f32 1.442695, %v1947_v52  ;;  %v2075_v45 = vmul.f32 1.442695, %v1948_v37 }
 0x323   : > { %2372 = vmatprep.mubr.f32.mxu0 %v3753_v44  ;;  %v2158_v47 = vadd.f32 %v3753_v44, %v3751_v27 }
 0x324   : > { %3766 = vpow2.f32 %v2073_v34  ;;  %2373 = vmatmul.mubr.f32.gmra.mxu0 %v3751_v27 }
 0x325   : > { %v3755_v51 = vpop.eup %3754  ;;  %3768 = vpow2.f32 %v2075_v45  ;;  %2159 = vadd.xlane.f32.xlu1 %v2158_v47 }
 0x326   : > { %v3757_v53 = vpop.eup %3756 }
 0x327   : > { %2377 = vmatprep.mubr.f32.mxu0 %v3757_v53  ;;  %v2161_v48 = vadd.f32 %v3757_v53, %v3755_v51 }
 0x328   : > { %2378 = vmatmul.mubr.f32.gmra.mxu0 %v3755_v51 }
 0x329   : > { %v3759_v12 = vpop.eup %3758  ;;  %2162 = vadd.xlane.f32.xlu0 %v2161_v48 }
 0x32a   : > { %v3761_v62 = vpop.eup %3760 }
 0x32b   : > { %2382 = vmatprep.mubr.f32.mxu0 %v3761_v62  ;;  %v2164_v50 = vadd.f32 %v3761_v62, %v3759_v12 }
 0x32c   : > { %2383 = vmatmul.mubr.f32.gmra.mxu0 %v3759_v12 }
 0x32d   : > { %v3763_v35 = vpop.eup %3762  ;;  %2165 = vadd.xlane.f32.xlu1 %v2164_v50 }
 0x32e   : > { %v3765_v7 = vpop.eup %3764 }
 0x32f   : > { %2387 = vmatprep.mubr.f32.mxu0 %v3765_v7  ;;  %v2167_v8 = vadd.f32 %v3765_v7, %v3763_v35 }
 0x330   : > { %2388 = vmatmul.mubr.f32.gmra.mxu0 %v3763_v35 }
 0x331   : > { %v3767_v58 = vpop.eup %3766  ;;  %2168 = vadd.xlane.f32.xlu0 %v2167_v8 }
 0x332   : > { %v3769_v60 = vpop.eup %3768 }
 0x333   : > { %2392 = vmatprep.mubr.f32.mxu0 %v3769_v60  ;;  %v2170_v63 = vadd.f32 %v3769_v60, %v3767_v58 }
 0x334   : > { %2393 = vmatmul.mubr.f32.gmra.mxu0 %v3767_v58 }
 0x335   : > { %2171 = vadd.xlane.f32.xlu1 %v2170_v63 }
 0x342   : > { %v2079_v57 = vpop.xlane.xlu0 %2078 }
 0x343   : > { %3770 = vrcp.f32 %v2079_v57 }
 0x346   : > { %v2082_v49 = vpop.xlane.xlu1 %2081 }
 0x347   : > { %3772 = vrcp.f32 %v2082_v49 }
 0x34a   : > { %v2085_v46 = vpop.xlane.xlu0 %2084 }
 0x34b   : > { %3774 = vrcp.f32 %v2085_v46 }
 0x34e   : > { %v2088_v56 = vpop.xlane.xlu1 %2087 }
 0x34f   : > { %3776 = vrcp.f32 %v2088_v56 }
 0x350   : > { %v3771_v59 = vpop.eup %3770 }
 0x352   : > { %v2091_v4 = vpop.xlane.xlu0 %2090 }
 0x353   : > { %3778 = vrcp.f32 %v2091_v4 }
 0x354   : > { %v3773_v43 = vpop.eup %3772 }
 0x356   : > { %v2094_v5 = vpop.xlane.xlu1 %2093 }
 0x357   : > { %3780 = vrcp.f32 %v2094_v5 }
 0x358   : > { %v3775_v20 = vpop.eup %3774 }
 0x35a   : > { %v2097_v25 = vpop.xlane.xlu0 %2096 }
 0x35b   : > { %3782 = vrcp.f32 %v2097_v25 }
 0x35c   : > { %v3777_v29 = vpop.eup %3776 }
 0x35e   : > { %v2100_v39 = vpop.xlane.xlu1 %2099 }
 0x35f   : > { %3784 = vrcp.f32 %v2100_v39 }
 0x360   : > { %v3779_v40 = vpop.eup %3778 }
 0x362   : > { %v2103_v22 = vpop.xlane.xlu0 %2102 }
 0x363   : > { %3786 = vrcp.f32 %v2103_v22 }
 0x364   : > { %v3781_v42 = vpop.eup %3780 }
 0x366   : > { %v2106_v3 = vpop.xlane.xlu1 %2105 }
 0x367   : > { %3788 = vrcp.f32 %v2106_v3 }
 0x368   : > { %v3783_v18 = vpop.eup %3782 }
 0x36a   : > { %v2109_v55 = vpop.xlane.xlu0 %2108 }
 0x36b   : > { %3790 = vrcp.f32 %v2109_v55 }
 0x36c   : > { %v3785_v26 = vpop.eup %3784 }
 0x36e   : > { %v2112_v2 = vpop.xlane.xlu1 %2111 }
 0x36f   : > { %3792 = vrcp.f32 %v2112_v2 }
 0x370   : > { %v3787_v31 = vpop.eup %3786 }
 0x372   : > { %v2115_v52 = vpop.xlane.xlu0 %2114 }
 0x373   : > { %3794 = vrcp.f32 %v2115_v52 }
 0x374   : > { %v3789_v34 = vpop.eup %3788 }
 0x376   : > { %v2118_v45 = vpop.xlane.xlu1 %2117 }
 0x377   : > { %3796 = vrcp.f32 %v2118_v45 }
 0x378   : > { %v2239_v0 = vpop.f32.mrf.mxu0  ;;  %v3791_v48 = vpop.eup %3790 }
 0x379   : > { %v2430_v10 = vmul.f32 %v3771_v59, %v2239_v0 }
 0x37a   : > { %v2241_v1 = vpop.f32.mrf.mxu0  ;;  %v2121_v12 = vpop.xlane.xlu0 %2120 }
 0x37b   : > { %3585 = vmatprep.mubr.msk.f32.mxu1 %vm450_vm0, %v2430_v10  ;;  %3798 = vrcp.f32 %v2121_v12 }
 0x37c   : > { %v2244_v14 = vpop.f32.mrf.mxu0  ;;  %v3793_v7 = vpop.eup %3792 }
 0x37d   : > { %v2431_v15 = vmul.f32 %v3773_v43, %v2244_v14 }
 0x37e   : > { %v2246_v23 = vpop.f32.mrf.mxu0  ;;  %v2124_v8 = vpop.xlane.xlu1 %2123 }
 0x37f   : > { %3586 = vmatmul.mubr.msk.f32.vlgmr.msra.gmra.mxu1 %vm450_vm0, %v2431_v15  ;;  %3800 = vrcp.f32 %v2124_v8 }
 0x380   : > { %v2249_v21 = vpop.f32.mrf.mxu0  ;;  %v3795_v57 = vpop.eup %3794 }
 0x381   : > { %v2432_v19 = vmul.f32 %v3775_v20, %v2249_v21 }
 0x382   : > { %v2251_v11 = vpop.f32.mrf.mxu0  ;;  %v2127_v49 = vpop.xlane.xlu0 %2126 }
 0x383   : > { %3588 = vmatprep.mubr.msk.f32.mxu1 %vm450_vm0, %v2432_v19  ;;  %3802 = vrcp.f32 %v2127_v49 }
 0x384   : > { %v2254_v41 = vpop.f32.mrf.mxu0  ;;  %v3797_v4 = vpop.eup %3796 }
 0x385   : > { %v2433_v6 = vmul.f32 %v3777_v29, %v2254_v41 }
 0x386   : > { %v2256_v9 = vpop.f32.mrf.mxu0  ;;  %v2130_v0 = vpop.xlane.xlu1 %2129 }
 0x387   : > { %3589 = vmatmul.mubr.msk.f32.gmra.mxu1 %vm450_vm0, %v2433_v6  ;;  %3804 = vrcp.f32 %v2130_v0 }
 0x388   : > { %v2259_v24 = vpop.f32.mrf.mxu0  ;;  %v3799_v5 = vpop.eup %3798 }
 0x389   : > { %v2434_v61 = vmul.f32 %v3779_v40, %v2259_v24 }
 0x38a   : > { %v2261_v30 = vpop.f32.mrf.mxu0  ;;  %v2133_v14 = vpop.xlane.xlu0 %2132 }
 0x38b   : > { %3591 = vmatprep.mubr.msk.f32.mxu1 %vm450_vm0, %v2434_v61  ;;  %3806 = vrcp.f32 %v2133_v14 }
 0x38c   : > { %v2264_v38 = vpop.f32.mrf.mxu0  ;;  %v3801_v25 = vpop.eup %3800 }
 0x38d   : > { %v2435_v54 = vmul.f32 %v3781_v42, %v2264_v38 }
 0x38e   : > { %v2266_v17 = vpop.f32.mrf.mxu0  ;;  %v2136_v21 = vpop.xlane.xlu1 %2135 }
 0x38f   : > { %3592 = vmatmul.mubr.msk.f32.gmra.mxu1 %vm450_vm0, %v2435_v54  ;;  %3808 = vrcp.f32 %v2136_v21 }
 0x390   : > { %v2269_v36 = vpop.f32.mrf.mxu0  ;;  %v3803_v39 = vpop.eup %3802 }
 0x391   : > { %v2436_v32 = vmul.f32 %v3783_v18, %v2269_v36 }
 0x392   : > { %v2271_v33 = vpop.f32.mrf.mxu0  ;;  %v2139_v41 = vpop.xlane.xlu0 %2138 }
 0x393   : > { %3594 = vmatprep.mubr.msk.f32.mxu1 %vm450_vm0, %v2436_v32  ;;  %3810 = vrcp.f32 %v2139_v41 }
 0x394   : > { %v2274_v28 = vpop.f32.mrf.mxu0  ;;  %v3805_v22 = vpop.eup %3804 }
 0x395   : > { %v2437_v13 = vmul.f32 %v3785_v26, %v2274_v28 }
 0x396   : > { %v2276_v16 = vpop.f32.mrf.mxu0  ;;  %v2142_v24 = vpop.xlane.xlu1 %2141 }
 0x397   : > { %3595 = vmatmul.mubr.msk.f32.gmra.mxu1 %vm450_vm0, %v2437_v13  ;;  %3812 = vrcp.f32 %v2142_v24 }
 0x398   : > { %v2279_v37 = vpop.f32.mrf.mxu0  ;;  %v3807_v3 = vpop.eup %3806 }
 0x399   : > { %v2438_v27 = vmul.f32 %v3787_v31, %v2279_v37 }
 0x39a   : > { %v2281_v44 = vpop.f32.mrf.mxu0  ;;  %v2145_v38 = vpop.xlane.xlu0 %2144 }
 0x39b   : > { %3597 = vmatprep.mubr.msk.f32.mxu1 %vm450_vm0, %v2438_v27  ;;  %3814 = vrcp.f32 %v2145_v38 }
 0x39c   : > { %v2284_v47 = vpop.f32.mrf.mxu0  ;;  %v3809_v55 = vpop.eup %3808 }
 0x39d   : > { %v2439_v51 = vmul.f32 %v3789_v34, %v2284_v47 }
 0x39e   : > { %v2286_v53 = vpop.f32.mrf.mxu0  ;;  %v2148_v36 = vpop.xlane.xlu1 %2147 }
 0x39f   : > { %3598 = vmatmul.mubr.msk.f32.gmra.mxu1 %vm450_vm0, %v2439_v51  ;;  %3816 = vrcp.f32 %v2148_v36 }
 0x3a0   : > { %v2289_v62 = vpop.f32.mrf.mxu0  ;;  %v3811_v2 = vpop.eup %3810 }
 0x3a1   : > { %v2440_v50 = vmul.f32 %v3791_v48, %v2289_v62 }
 0x3a2   : > { %v2291_v35 = vpop.f32.mrf.mxu0  ;;  %v2151_v28 = vpop.xlane.xlu0 %2150 }
 0x3a3   : > { %3600 = vmatprep.mubr.msk.f32.mxu1 %vm450_vm0, %v2440_v50  ;;  %3818 = vrcp.f32 %v2151_v28 }
 0x3a4   : > { %v2294_v58 = vpop.f32.mrf.mxu0  ;;  %v3813_v52 = vpop.eup %3812 }
 0x3a5   : > { %v2441_v60 = vmul.f32 %v3793_v7, %v2294_v58 }
 0x3a6   : > { %v2296_v63 = vpop.f32.mrf.mxu0  ;;  %v2154_v37 = vpop.xlane.xlu1 %2153 }
 0x3a7   : > { %3601 = vmatmul.mubr.msk.f32.gmra.mxu1 %vm450_vm0, %v2441_v60  ;;  %3820 = vrcp.f32 %v2154_v37 }
 0x3a8   : > { %v2299_v46 = vpop.f32.mrf.mxu0  ;;  %v3815_v45 = vpop.eup %3814 }
 0x3a9   : > { %v2442_v56 = vmul.f32 %v3795_v57, %v2299_v46 }
 0x3aa   : > { %v2301_v59 = vpop.f32.mrf.mxu0  ;;  %v2157_v47 = vpop.xlane.xlu0 %2156 }
 0x3ab   : > { %3603 = vmatprep.mubr.msk.f32.mxu1 %vm450_vm0, %v2442_v56  ;;  %3822 = vrcp.f32 %v2157_v47 }
 0x3ac   : > { %v2304_v10 = vpop.f32.mrf.mxu0  ;;  %v3817_v12 = vpop.eup %3816 }
 0x3ad   : > { %v2443_v1 = vmul.f32 %v3797_v4, %v2304_v10 }
 0x3ae   : > { %v2306_v43 = vpop.f32.mrf.mxu0  ;;  %v2160_v62 = vpop.xlane.xlu1 %2159 }
 0x3af   : > { %3604 = vmatmul.mubr.msk.f32.gmra.mxu1 %vm450_vm0, %v2443_v1  ;;  %3824 = vrcp.f32 %v2160_v62 }
 0x3b0   : > { %v2309_v15 = vpop.f32.mrf.mxu0  ;;  %v3819_v8 = vpop.eup %3818 }
 0x3b1   : > { %v2444_v23 = vmul.f32 %v3799_v5, %v2309_v15 }
 0x3b2   : > { %v2311_v20 = vpop.f32.mrf.mxu0  ;;  %v2163_v58 = vpop.xlane.xlu0 %2162 }
 0x3b3   : > { %3606 = vmatprep.mubr.msk.f32.mxu1 %vm450_vm0, %v2444_v23  ;;  %3826 = vrcp.f32 %v2163_v58  ;;  %v2800_v58 = vld [vmem:[%s5087_s20 + $0x30] sm:$0xff] }
 0x3b4   : > { %v2314_v19 = vpop.f32.mrf.mxu0  ;;  %v3821_v49 = vpop.eup %3820 }
 0x3b5   : > { %v2445_v11 = vmul.f32 %v3801_v25, %v2314_v19 }
 0x3b6   : > { %v2316_v29 = vpop.f32.mrf.mxu0  ;;  %v2166_v46 = vpop.xlane.xlu1 %2165 }
 0x3b7   : > { %3607 = vmatmul.mubr.msk.f32.gmra.mxu1 %vm450_vm0, %v2445_v11  ;;  %3828 = vrcp.f32 %v2166_v46  ;;  %v2803_v46 = vld [vmem:[%s5087_s20 + $0x48] sm:$0xff] }
 0x3b8   : > { %v2319_v6 = vpop.f32.mrf.mxu0  ;;  %v3823_v0 = vpop.eup %3822 }
 0x3b9   : > { %v2446_v9 = vmul.f32 %v3803_v39, %v2319_v6 }
 0x3ba   : > { %v2321_v40 = vpop.f32.mrf.mxu0  ;;  %v2169_v10 = vpop.xlane.xlu0 %2168 }
 0x3bb   : > { %3609 = vmatprep.mubr.msk.f32.mxu1 %vm450_vm0, %v2446_v9  ;;  %3830 = vrcp.f32 %v2169_v10 }
 0x3bc   : > { %v2324_v61 = vpop.f32.mrf.mxu0  ;;  %v3825_v14 = vpop.eup %3824 }
 0x3bd   : > { %v2447_v30 = vmul.f32 %v3805_v22, %v2324_v61 }
 0x3be   : > { %v2326_v42 = vpop.f32.mrf.mxu0  ;;  %v2172_v15 = vpop.xlane.xlu1 %2171 }
 0x3bf   : > { %3610 = vmatmul.mubr.msk.f32.gmra.mxu1 %vm450_vm0, %v2447_v30  ;;  %3832 = vrcp.f32 %v2172_v15 }
 0x3c0   : > { %v2329_v54 = vpop.f32.mrf.mxu0  ;;  %v3827_v21 = vpop.eup %3826 }
 0x3c1   : > { %v2448_v17 = vmul.f32 %v3807_v3, %v2329_v54  ;;  %v5092_v54 = vld [vmem:[%s5241_s10] ss:$0 sm:$0xff] }
 0x3c2   : > { %v2331_v18 = vpop.f32.mrf.mxu0 }
 0x3c3   : > { %3612 = vmatprep.mubr.msk.f32.mxu1 %vm450_vm0, %v2448_v17  ;;  %v2795_v18 = vld [vmem:[%s5087_s20 + $0x8] sm:$0xff] }
 0x3c4   : > { %v2334_v32 = vpop.f32.mrf.mxu0  ;;  %v3829_v39 = vpop.eup %3828 }
 0x3c5   : > { %v2449_v33 = vmul.f32 %v3809_v55, %v2334_v32  ;;  %v2794_v32 = vld [vmem:[%s5087_s20] sm:$0xff] }
 0x3c6   : > { %v2336_v26 = vpop.f32.mrf.mxu0 }
 0x3c7   : > { %3613 = vmatmul.mubr.msk.f32.gmra.mxu1 %vm450_vm0, %v2449_v33 }
 0x3c8   : > { %v2339_v13 = vpop.f32.mrf.mxu0  ;;  %v3831_v40 = vpop.eup %3830 }
 0x3c9   : > { %v2450_v16 = vmul.f32 %v3811_v2, %v2339_v13  ;;  %v2797_v13 = vld [vmem:[%s5087_s20 + $0x18] sm:$0xff] }
 0x3ca   : > { %v2341_v31 = vpop.f32.mrf.mxu0 }
 0x3cb   : > { %3615 = vmatprep.mubr.msk.f32.mxu1 %vm450_vm0, %v2450_v16 }
 0x3cc   : > { %v2344_v27 = vpop.f32.mrf.mxu0  ;;  %v3833_v30 = vpop.eup %3832 }
 0x3cd   : > { %v2451_v44 = vmul.f32 %v3813_v52, %v2344_v27  ;;  %v2796_v52 = vld [vmem:[%s5087_s20 + $0x10] sm:$0xff] }
 0x3ce   : > { %v2346_v34 = vpop.f32.mrf.mxu0 }
 0x3cf   : > { %3616 = vmatmul.mubr.msk.f32.gmra.mxu1 %vm450_vm0, %v2451_v44 }
 0x3d0   : > { %v2349_v51 = vpop.f32.mrf.mxu0 }
 0x3d1   : > { %v2452_v53 = vmul.f32 %v3815_v45, %v2349_v51  ;;  %v2799_v45 = vld [vmem:[%s5087_s20 + $0x28] sm:$0xff] }
 0x3d2   : > { %v2351_v48 = vpop.f32.mrf.mxu0 }
 0x3d3   : > { %3618 = vmatprep.mubr.msk.f32.mxu1 %vm450_vm0, %v2452_v53  ;;  %v2798_v53 = vld [vmem:[%s5087_s20 + $0x20] sm:$0xff] }
 0x3d4   : > { %v2354_v50 = vpop.f32.mrf.mxu0 }
 0x3d5   : > { %v2453_v35 = vmul.f32 %v3817_v12, %v2354_v50 }
 0x3d6   : > { %v2356_v7 = vpop.f32.mrf.mxu0 }
 0x3d7   : > { %3619 = vmatmul.mubr.msk.f32.gmra.mxu1 %vm450_vm0, %v2453_v35  ;;  %v2801_v35 = vld [vmem:[%s5087_s20 + $0x38] sm:$0xff] }
 0x3d8   : > { %v2359_v60 = vpop.f32.mrf.mxu0 }
 0x3d9   : > { %v2454_v63 = vmul.f32 %v3819_v8, %v2359_v60 }
 0x3da   : > { %v2361_v57 = vpop.f32.mrf.mxu0 }
 0x3db   : > { %3621 = vmatprep.mubr.msk.f32.mxu1 %vm450_vm0, %v2454_v63 }
 0x3dc   : > { %v2364_v56 = vpop.f32.mrf.mxu0 }
 0x3dd   : > { %v2455_v59 = vmul.f32 %v3821_v49, %v2364_v56 }
 0x3de   : > { %v2366_v4 = vpop.f32.mrf.mxu0 }
 0x3df   : > { %3622 = vmatmul.mubr.msk.f32.gmra.mxu1 %vm450_vm0, %v2455_v59  ;;  %v2802_v4 = vld [vmem:[%s5087_s20 + $0x40] sm:$0xff] }
 0x3e0   : > { %v2369_v1 = vpop.f32.mrf.mxu0 }
 0x3e1   : > { %v2456_v43 = vmul.f32 %v3823_v0, %v2369_v1 }
 0x3e2   : > { %v2371_v5 = vpop.f32.mrf.mxu0 }
 0x3e3   : > { %3624 = vmatprep.mubr.msk.f32.mxu1 %vm450_vm0, %v2456_v43  ;;  %v2805_v5 = vld [vmem:[%s5087_s20 + $0x58] sm:$0xff] }
 0x3e4   : > { %v2374_v23 = vpop.f32.mrf.mxu0 }
 0x3e5   : > { %v2457_v20 = vmul.f32 %v3825_v14, %v2374_v23  ;;  %v2804_v23 = vld [vmem:[%s5087_s20 + $0x50] sm:$0xff] }
 0x3e6   : > { %v2376_v25 = vpop.f32.mrf.mxu0 }
 0x3e7   : > { %3625 = vmatmul.mubr.msk.f32.gmra.mxu1 %vm450_vm0, %v2457_v20 }
 0x3e8   : > { %v2379_v19 = vpop.f32.mrf.mxu0 }
 0x3e9   : > { %v2458_v11 = vmul.f32 %v3827_v21, %v2379_v19 }
 0x3ea   : > { %v2381_v29 = vpop.f32.mrf.mxu0 }
 0x3eb   : > { %3627 = vmatprep.mubr.msk.f32.mxu1 %vm450_vm0, %v2458_v11  ;;  %v2807_v11 = vld [vmem:[%s5087_s20 + $0x68] sm:$0xff] }
 0x3ec   : > { %v2384_v41 = vpop.f32.mrf.mxu0 }
 0x3ed   : > { %v2459_v6 = vmul.f32 %v3829_v39, %v2384_v41  ;;  %v2806_v41 = vld [vmem:[%s5087_s20 + $0x60] sm:$0xff] }
 0x3ee   : > { %v2386_v9 = vpop.f32.mrf.mxu0 }
 0x3ef   : > { %3628 = vmatmul.mubr.msk.f32.gmra.mxu1 %vm450_vm0, %v2459_v6 }
 0x3f0   : > { %v2389_v22 = vpop.f32.mrf.mxu0 }
 0x3f1   : > { %v2460_v24 = vmul.f32 %v3831_v40, %v2389_v22 }
 0x3f2   : > { %v2391_v61 = vpop.f32.mrf.mxu0 }
 0x3f3   : > { %3630 = vmatprep.mubr.msk.f32.mxu1 %vm450_vm0, %v2460_v24  ;;  %v2809_v24 = vld [vmem:[%s5087_s20 + $0x78] sm:$0xff] }
 0x3f4   : > { %v2394_v42 = vpop.f32.mrf.mxu0 }
 0x3f5   : > { %v2461_v3 = vmul.f32 %v3833_v30, %v2394_v42  ;;  %v2808_v42 = vld [vmem:[%s5087_s20 + $0x70] sm:$0xff] }
 0x3f6   : > { %v2396_v38 = vpop.f32.mrf.mxu0 }
 0x3f7   : > { %3631 = vmatmul.mubr.msk.f32.gmra.mxu1 %vm450_vm0, %v2461_v3 }
 0x43f   : > { %v3587_v17 = vpop.f32.mrf.mxu1 }
 0x440   : > { %v2641_v55 = vadd.f32 %v3587_v17, %v5092_v54 }
 0x441   : > { %v2635_v36 = vpop.f32.mrf.mxu1 }
 0x442   : > { %v2827_v33 = vadd.f32 %v2795_v18, %v2641_v55  ;;  %v2636_v26 = vadd.f32 %v5092_v54, %v2635_v36  ;;  %v2811_v55 = vld [vmem:[%s5087_s20 + $0x88] sm:$0xff] }
 0x444   : > { %2859 = vst.msk [vmem:[%s5100_s25 + $0x8] sm:$0xff] %vm450_vm0, %v2827_v33  ;;  %v2826_v2 = vadd.f32 %v2794_v32, %v2636_v26  ;;  %v2810_v33 = vld [vmem:[%s5087_s20 + $0x80] sm:$0xff] }
 0x446   : > { %2858 = vst.msk [vmem:[%s5100_s25] sm:$0xff] %vm450_vm0, %v2826_v2 }
 0x447   : > { %v3590_v28 = vpop.f32.mrf.mxu1 }
 0x448   : > { %v2651_v16 = vadd.f32 %v3590_v28, %v5092_v54 }
 0x449   : > { %v2645_v31 = vpop.f32.mrf.mxu1 }
 0x44a   : > { %v2829_v37 = vadd.f32 %v2797_v13, %v2651_v16  ;;  %v2646_v27 = vadd.f32 %v5092_v54, %v2645_v31  ;;  %v2813_v16 = vld [vmem:[%s5087_s20 + $0x98] sm:$0xff] }
 0x44c   : > { %2861 = vst.msk [vmem:[%s5100_s25 + $0x18] sm:$0xff] %vm450_vm0, %v2829_v37  ;;  %v2828_v44 = vadd.f32 %v2796_v52, %v2646_v27  ;;  %v2812_v37 = vld [vmem:[%s5087_s20 + $0x90] sm:$0xff] }
 0x44e   : > { %2860 = vst.msk [vmem:[%s5100_s25 + $0x10] sm:$0xff] %vm450_vm0, %v2828_v44 }
 0x44f   : > { %v3593_v34 = vpop.f32.mrf.mxu1 }
 0x450   : > { %v2661_v47 = vadd.f32 %v3593_v34, %v5092_v54 }
 0x451   : > { %v2655_v51 = vpop.f32.mrf.mxu1 }
 0x452   : > { %v2831_v48 = vadd.f32 %v2799_v45, %v2661_v47  ;;  %v2656_v12 = vadd.f32 %v5092_v54, %v2655_v51  ;;  %v2815_v47 = vld [vmem:[%s5087_s20 + $0xa8] sm:$0xff] }
 0x454   : > { %2863 = vst.msk [vmem:[%s5100_s25 + $0x28] sm:$0xff] %vm450_vm0, %v2831_v48  ;;  %v2830_v62 = vadd.f32 %v2798_v53, %v2656_v12  ;;  %v2814_v48 = vld [vmem:[%s5087_s20 + $0xa0] sm:$0xff] }
 0x456   : > { %2862 = vst.msk [vmem:[%s5100_s25 + $0x20] sm:$0xff] %vm450_vm0, %v2830_v62 }
 0x457   : > { %v3596_v50 = vpop.f32.mrf.mxu1 }
 0x458   : > { %v2671_v7 = vadd.f32 %v3596_v50, %v5092_v54 }
 0x459   : > { %v2665_v8 = vpop.f32.mrf.mxu1 }
 0x45a   : > { %v2833_v60 = vadd.f32 %v2801_v35, %v2671_v7  ;;  %v2666_v63 = vadd.f32 %v5092_v54, %v2665_v8  ;;  %v2817_v7 = vld [vmem:[%s5087_s20 + $0xb8] sm:$0xff] }
 0x45c   : > { %2865 = vst.msk [vmem:[%s5100_s25 + $0x38] sm:$0xff] %vm450_vm0, %v2833_v60  ;;  %v2832_v57 = vadd.f32 %v2800_v58, %v2666_v63  ;;  %v2816_v60 = vld [vmem:[%s5087_s20 + $0xb0] sm:$0xff] }
 0x45e   : > { %2864 = vst.msk [vmem:[%s5100_s25 + $0x30] sm:$0xff] %vm450_vm0, %v2832_v57 }
 0x45f   : > { %v3599_v49 = vpop.f32.mrf.mxu1 }
 0x460   : > { %v2681_v56 = vadd.f32 %v3599_v49, %v5092_v54 }
 0x461   : > { %v2675_v59 = vpop.f32.mrf.mxu1 }
 0x462   : > { %v2835_v0 = vadd.f32 %v2803_v46, %v2681_v56  ;;  %v2676_v10 = vadd.f32 %v5092_v54, %v2675_v59  ;;  %v2819_v56 = vld [vmem:[%s5087_s20 + $0xc8] sm:$0xff] }
 0x464   : > { %2867 = vst.msk [vmem:[%s5100_s25 + $0x48] sm:$0xff] %vm450_vm0, %v2835_v0  ;;  %v2834_v1 = vadd.f32 %v2802_v4, %v2676_v10  ;;  %v2818_v0 = vld [vmem:[%s5087_s20 + $0xc0] sm:$0xff] }
 0x466   : > { %2866 = vst.msk [vmem:[%s5100_s25 + $0x40] sm:$0xff] %vm450_vm0, %v2834_v1 }
 0x467   : > { %v3602_v43 = vpop.f32.mrf.mxu1 }
 0x468   : > { %v2691_v14 = vadd.f32 %v3602_v43, %v5092_v54 }
 0x469   : > { %v2685_v15 = vpop.f32.mrf.mxu1 }
 0x46a   : > { %v2837_v20 = vadd.f32 %v2805_v5, %v2691_v14  ;;  %v2686_v25 = vadd.f32 %v5092_v54, %v2685_v15  ;;  %v2821_v14 = vld [vmem:[%s5087_s20 + $0xd8] sm:$0xff] }
 0x46c   : > { %2869 = vst.msk [vmem:[%s5100_s25 + $0x58] sm:$0xff] %vm450_vm0, %v2837_v20  ;;  %v2836_v21 = vadd.f32 %v2804_v23, %v2686_v25  ;;  %v2820_v20 = vld [vmem:[%s5087_s20 + $0xd0] sm:$0xff] }
 0x46e   : > { %2868 = vst.msk [vmem:[%s5100_s25 + $0x50] sm:$0xff] %vm450_vm0, %v2836_v21 }
 0x46f   : > { %v3605_v19 = vpop.f32.mrf.mxu1 }
 0x470   : > { %v2701_v29 = vadd.f32 %v3605_v19, %v5092_v54 }
 0x471   : > { %v2695_v39 = vpop.f32.mrf.mxu1 }
 0x472   : > { %v2839_v6 = vadd.f32 %v2807_v11, %v2701_v29  ;;  %v2696_v9 = vadd.f32 %v5092_v54, %v2695_v39  ;;  %v2823_v29 = vld [vmem:[%s5087_s20 + $0xe8] sm:$0xff] }
 0x474   : > { %2871 = vst.msk [vmem:[%s5100_s25 + $0x68] sm:$0xff] %vm450_vm0, %v2839_v6  ;;  %v2838_v40 = vadd.f32 %v2806_v41, %v2696_v9  ;;  %v2822_v6 = vld [vmem:[%s5087_s20 + $0xe0] sm:$0xff] }
 0x476   : > { %2870 = vst.msk [vmem:[%s5100_s25 + $0x60] sm:$0xff] %vm450_vm0, %v2838_v40 }
 0x477   : > { %v3608_v22 = vpop.f32.mrf.mxu1 }
 0x478   : > { %v2711_v61 = vadd.f32 %v3608_v22, %v5092_v54 }
 0x479   : > { %v2705_v30 = vpop.f32.mrf.mxu1 }
 0x47a   : > { %v2841_v3 = vadd.f32 %v2809_v24, %v2711_v61  ;;  %v2706_v38 = vadd.f32 %v5092_v54, %v2705_v30  ;;  %v2825_v61 = vld [vmem:[%s5087_s20 + $0xf8] sm:$0xff] }
 0x47c   : > { %2873 = vst.msk [vmem:[%s5100_s25 + $0x78] sm:$0xff] %vm450_vm0, %v2841_v3  ;;  %v2840_v17 = vadd.f32 %v2808_v42, %v2706_v38  ;;  %v2824_v3 = vld [vmem:[%s5087_s20 + $0xf0] sm:$0xff] }
 0x47e   : > { %2872 = vst.msk [vmem:[%s5100_s25 + $0x70] sm:$0xff] %vm450_vm0, %v2840_v17 }
 0x47f   : > { %v3611_v18 = vpop.f32.mrf.mxu1 }
 0x480   : > { %v2721_v36 = vadd.f32 %v3611_v18, %v5092_v54 }
 0x481   : > { %v2715_v32 = vpop.f32.mrf.mxu1 }
 0x482   : > { %v2843_v26 = vadd.f32 %v2811_v55, %v2721_v36  ;;  %v2716_v2 = vadd.f32 %v5092_v54, %v2715_v32 }
 0x484   : > { %2875 = vst.msk [vmem:[%s5100_s25 + $0x88] sm:$0xff] %vm450_vm0, %v2843_v26  ;;  %v2842_v28 = vadd.f32 %v2810_v33, %v2716_v2 }
 0x486   : > { %2874 = vst.msk [vmem:[%s5100_s25 + $0x80] sm:$0xff] %vm450_vm0, %v2842_v28 }
 0x487   : > { %v3614_v13 = vpop.f32.mrf.mxu1 }
 0x488   : > { %v2731_v31 = vadd.f32 %v3614_v13, %v5092_v54 }
 0x489   : > { %v2725_v52 = vpop.f32.mrf.mxu1 }
 0x48a   : > { %v2845_v27 = vadd.f32 %v2813_v16, %v2731_v31  ;;  %v2726_v44 = vadd.f32 %v5092_v54, %v2725_v52 }
 0x48c   : > { %2877 = vst.msk [vmem:[%s5100_s25 + $0x98] sm:$0xff] %vm450_vm0, %v2845_v27  ;;  %v2844_v34 = vadd.f32 %v2812_v37, %v2726_v44 }
 0x48e   : > { %2876 = vst.msk [vmem:[%s5100_s25 + $0x90] sm:$0xff] %vm450_vm0, %v2844_v34 }
 0x48f   : > { %v3617_v45 = vpop.f32.mrf.mxu1 }
 0x490   : > { %v2741_v51 = vadd.f32 %v3617_v45, %v5092_v54 }
 0x491   : > { %v2735_v53 = vpop.f32.mrf.mxu1 }
 0x492   : > { %v2847_v12 = vadd.f32 %v2815_v47, %v2741_v51  ;;  %v2736_v62 = vadd.f32 %v5092_v54, %v2735_v53 }
 0x494   : > { %2879 = vst.msk [vmem:[%s5100_s25 + $0xa8] sm:$0xff] %vm450_vm0, %v2847_v12  ;;  %v2846_v50 = vadd.f32 %v2814_v48, %v2736_v62 }
 0x496   : > { %2878 = vst.msk [vmem:[%s5100_s25 + $0xa0] sm:$0xff] %vm450_vm0, %v2846_v50 }
 0x497   : > { %v3620_v35 = vpop.f32.mrf.mxu1 }
 0x498   : > { %v2751_v8 = vadd.f32 %v3620_v35, %v5092_v54 }
 0x499   : > { %v2745_v58 = vpop.f32.mrf.mxu1 }
 0x49a   : > { %v2849_v63 = vadd.f32 %v2817_v7, %v2751_v8  ;;  %v2746_v57 = vadd.f32 %v5092_v54, %v2745_v58 }
 0x49c   : > { %2881 = vst.msk [vmem:[%s5100_s25 + $0xb8] sm:$0xff] %vm450_vm0, %v2849_v63  ;;  %v2848_v49 = vadd.f32 %v2816_v60, %v2746_v57 }
 0x49e   : > { %2880 = vst.msk [vmem:[%s5100_s25 + $0xb0] sm:$0xff] %vm450_vm0, %v2848_v49 }
 0x49f   : > { %v3623_v46 = vpop.f32.mrf.mxu1 }
 0x4a0   : > { %v2761_v59 = vadd.f32 %v3623_v46, %v5092_v54 }
 0x4a1   : > { %v2755_v4 = vpop.f32.mrf.mxu1 }
 0x4a2   : > { %v2851_v10 = vadd.f32 %v2819_v56, %v2761_v59  ;;  %v2756_v1 = vadd.f32 %v5092_v54, %v2755_v4 }
 0x4a4   : > { %2883 = vst.msk [vmem:[%s5100_s25 + $0xc8] sm:$0xff] %vm450_vm0, %v2851_v10  ;;  %v2850_v43 = vadd.f32 %v2818_v0, %v2756_v1 }
 0x4a6   : > { %2882 = vst.msk [vmem:[%s5100_s25 + $0xc0] sm:$0xff] %vm450_vm0, %v2850_v43 }
 0x4a7   : > { %v3626_v5 = vpop.f32.mrf.mxu1 }
 0x4a8   : > { %v2771_v15 = vadd.f32 %v3626_v5, %v5092_v54 }
 0x4a9   : > { %v2765_v23 = vpop.f32.mrf.mxu1 }
 0x4aa   : > { %v2853_v25 = vadd.f32 %v2821_v14, %v2771_v15  ;;  %v2766_v21 = vadd.f32 %v5092_v54, %v2765_v23 }
 0x4ac   : > { %2885 = vst.msk [vmem:[%s5100_s25 + $0xd8] sm:$0xff] %vm450_vm0, %v2853_v25  ;;  %v2852_v19 = vadd.f32 %v2820_v20, %v2766_v21 }
 0x4ae   : > { %2884 = vst.msk [vmem:[%s5100_s25 + $0xd0] sm:$0xff] %vm450_vm0, %v2852_v19 }
 0x4af   : > { %v3629_v11 = vpop.f32.mrf.mxu1 }
 0x4b0   : > { %v2781_v39 = vadd.f32 %v3629_v11, %v5092_v54 }
 0x4b1   : > { %v2775_v41 = vpop.f32.mrf.mxu1 }
 0x4b2   : > { %v2855_v9 = vadd.f32 %v2823_v29, %v2781_v39  ;;  %v2776_v40 = vadd.f32 %v5092_v54, %v2775_v41 }
 0x4b4   : > { %2887 = vst.msk [vmem:[%s5100_s25 + $0xe8] sm:$0xff] %vm450_vm0, %v2855_v9  ;;  %v2854_v22 = vadd.f32 %v2822_v6, %v2776_v40 }
 0x4b6   : > { %2886 = vst.msk [vmem:[%s5100_s25 + $0xe0] sm:$0xff] %vm450_vm0, %v2854_v22 }
 0x4b7   : > { %v3632_v24 = vpop.f32.mrf.mxu1 }
 0x4b8   : > { %v2791_v30 = vadd.f32 %v3632_v24, %v5092_v54 }
 0x4b9   : > { %v2785_v42 = vpop.f32.mrf.mxu1 }
 0x4ba   : > { %v2857_v38 = vadd.f32 %v2825_v61, %v2791_v30  ;;  %v2786_v17 = vadd.f32 %v5092_v54, %v2785_v42 }
 0x4bc   : > { %2889 = vst.msk [vmem:[%s5100_s25 + $0xf8] sm:$0xff] %vm450_vm0, %v2857_v38  ;;  %v2856_v18 = vadd.f32 %v2824_v3, %v2786_v17 }
 0x4be   : > { %2888 = vst.msk [vmem:[%s5100_s25 + $0xf0] sm:$0xff] %vm450_vm0, %v2856_v18 }
 0x4bf PF: > { %s21_s17 = sadd.s32 1, %s3840_s17  }
 0x4c0   : > { %p18_p4 = scmp.ge.s32.totalorder %s21_s17, 4  }
 0x4c2   :  { %20 = sbr.rel (!%p18_p4) target bundleno = 1 (0x1), region = 97 }

</bundles_post_ra>
